<compile_context>
chip_gen: v6e
topology: v6e:2x2x1
jax: 0.10.0
libtpu: 0.0.40
codegen_flags: <defaults>
</compile_context>

<pallas_src>
import functools

import jax
import jax.numpy as jnp
from jax import lax
from jax.experimental import pallas as pl
from jax.experimental.pallas import tpu as pltpu

LANES = 128                    # vreg lane width; one packed row holds LANES points
TM_PIPE = 2048                 # default packed-row tile for the streaming passes
EPS_DIAMETER = 0.01


def _tpu_vmem_limit_bytes():
    """Generation-aware scoped-VMEM limit: ~48 MiB on v7x, 96 MiB on v5e/v6e."""
    try:
        phys = int(pltpu.get_tpu_info().vmem_capacity_bytes)
    except Exception:
        phys = 64 * 1024 * 1024            # conservative fallback (v7x per-core VMEM)
    return min(phys * 3 // 4, 96 * 1024 * 1024)


# --------------------------------------------------------------------------------------
# Fused single-block kernel (small / medium inputs): stats + epilogue + normalize in one
# pass over x.  Layout: x is a (m, D*128) slab; column l holds coordinate l % D.
# --------------------------------------------------------------------------------------
def _make_fused_kernel(*, n_flat, n_points, d, row_w, has_w, log_diameter, need_mask):
    def kernel(*refs):
        if has_w:
            x_ref, w_ref, coord_ref, o_ref, diam_ref = refs
        else:
            x_ref, coord_ref, o_ref, diam_ref = refs

        x = x_ref[...].astype(jnp.float32)
        coord = coord_ref[...]                                     # (1, row_w) int32 == l % d

        if need_mask:
            # zero padding only hurts min/max; sums are safe because the pad is exactly 0
            flat_idx = (lax.broadcasted_iota(jnp.int32, x.shape, 0) * row_w
                        + lax.broadcasted_iota(jnp.int32, x.shape, 1))
            valid = flat_idx < n_flat
            x_for_min = jnp.where(valid, x, jnp.inf)
            x_for_max = jnp.where(valid, x, -jnp.inf)
        else:
            x_for_min = x
            x_for_max = x

        col_min = jnp.min(x_for_min, axis=0, keepdims=True)        # (1, row_w)
        col_max = jnp.max(x_for_max, axis=0, keepdims=True)        # (1, row_w)
        if has_w:
            wv = w_ref[...].astype(jnp.float32)                    # zero-padded tail
            col_sum = jnp.sum(x * wv, axis=0, keepdims=True)
            col_wsum = jnp.sum(wv, axis=0, keepdims=True)
        else:
            col_sum = jnp.sum(x, axis=0, keepdims=True)

        # fold the D*128 columns down to per-coordinate scalars (D is tiny and static)
        diameter = None
        centers = []
        for c in range(d):
            mc = coord == c
            mn_c = jnp.min(jnp.where(mc, col_min, jnp.inf), axis=1, keepdims=True)
            mx_c = jnp.max(jnp.where(mc, col_max, -jnp.inf), axis=1, keepdims=True)
            s_c = jnp.sum(jnp.where(mc, col_sum, 0.0), axis=1, keepdims=True)
            ext = mx_c - mn_c
            diameter = ext if diameter is None else jnp.maximum(diameter, ext)
            centers.append(s_c)

        if has_w:
            # each weight appears exactly once in the coordinate-0 columns -> matches the
            # torch `w.sum() == 0` check without the /d rounding of the previous version
            w_total = jnp.sum(jnp.where(coord == 0, col_wsum, 0.0), axis=1, keepdims=True)
            denom = jnp.where(w_total == 0.0, 1.0, w_total)
        else:
            denom = float(n_points)

        inv_scale = 1.0 / (diameter + EPS_DIAMETER)                # (1, 1)

        # lane-dense center row matching the packed layout
        center_row = jnp.zeros((1, row_w), jnp.float32)
        for c in range(d):
            center_row = jnp.where(coord == c, centers[c] / denom, center_row)

        o_ref[...] = ((x - center_row) * inv_scale).astype(o_ref.dtype)

        dia = diameter
        if log_diameter:
            dia = jnp.log(dia + 1.0)
        diam_ref[...] = dia.astype(diam_ref.dtype)

    return kernel


# --------------------------------------------------------------------------------------
# 2-pass pipeline for large inputs: pass 1 reduces per-column stats into per-core
# resident accumulators, tiny glue folds them to per-coordinate values, pass 2
# normalizes elementwise.
# --------------------------------------------------------------------------------------
def _make_reduce_kernel(*, n_flat, row_w, tm, num_blocks, bpc, has_w, ragged_last):
    def kernel(*refs):
        if has_w:
            x_ref, w_ref, mn_ref, mx_ref, sm_ref, ws_ref = refs
        else:
            x_ref, mn_ref, mx_ref, sm_ref = refs
        c = pl.program_id(0)
        i = pl.program_id(1)
        b = c * bpc + i                       # global block id (may exceed num_blocks-1)

        @pl.when(i == 0)
        def _init():
            mn_ref[...] = jnp.full(mn_ref.shape, jnp.inf, jnp.float32)
            mx_ref[...] = jnp.full(mx_ref.shape, -jnp.inf, jnp.float32)
            sm_ref[...] = jnp.zeros(sm_ref.shape, jnp.float32)
            if has_w:
                ws_ref[...] = jnp.zeros(ws_ref.shape, jnp.float32)

        def accumulate(masked):
            x = x_ref[...].astype(jnp.float32)
            wv = w_ref[...].astype(jnp.float32) if has_w else None
            if masked:
                base = b * (tm * row_w)
                flat_idx = base + (lax.broadcasted_iota(jnp.int32, x.shape, 0) * row_w
                                   + lax.broadcasted_iota(jnp.int32, x.shape, 1))
                valid = flat_idx < n_flat
                x_for_min = jnp.where(valid, x, jnp.inf)
                x_for_max = jnp.where(valid, x, -jnp.inf)
                x_for_sum = jnp.where(valid, x, 0.0)
                if has_w:
                    wv = jnp.where(valid, wv, 0.0)
            else:
                x_for_min = x_for_max = x_for_sum = x

            # accumulator blocks are (8, row_w); the (1, row_w) partials broadcast in.
            mn_ref[...] = jnp.minimum(mn_ref[...],
                                      jnp.min(x_for_min, axis=0, keepdims=True))
            mx_ref[...] = jnp.maximum(mx_ref[...],
                                      jnp.max(x_for_max, axis=0, keepdims=True))
            if has_w:
                sm_ref[...] = sm_ref[...] + jnp.sum(x_for_sum * wv, axis=0, keepdims=True)
                ws_ref[...] = ws_ref[...] + jnp.sum(wv, axis=0, keepdims=True)
            else:
                sm_ref[...] = sm_ref[...] + jnp.sum(x_for_sum, axis=0, keepdims=True)

        if ragged_last:
            # only the very last block contains zero padding / ragged (garbage) rows
            @pl.when(b == num_blocks - 1)
            def _last():
                accumulate(True)

            @pl.when(b < num_blocks - 1)
            def _interior():
                accumulate(False)
        else:
            @pl.when(b < num_blocks)
            def _all():
                accumulate(False)

    return kernel


def _normalize_kernel(x_ref, center_ref, scale_ref, o_ref):
    x = x_ref[...].astype(jnp.float32)
    o_ref[...] = ((x - center_ref[...]) * scale_ref[...]).astype(o_ref.dtype)


# --------------------------------------------------------------------------------------
# Segment-wise fallback (idx is not None)
# --------------------------------------------------------------------------------------
def _scatter_forward_jax(pos, idx, w, num_super, log_diameter):
    # TODO(synk): segment-wise (idx is not None) path uses plain-JAX segment ops, not Pallas.
    if num_super is None:
        num_super = int(idx.max()) + 1
    mn = jax.ops.segment_min(pos, idx, num_segments=num_super)
    mx = jax.ops.segment_max(pos, idx, num_segments=num_super)
    diameter_seg = jnp.max(mx - mn, axis=1)
    if w is None:
        s = jax.ops.segment_sum(pos, idx, num_segments=num_super)
        cnt = jax.ops.segment_sum(jnp.ones((pos.shape[0],), pos.dtype), idx,
                                  num_segments=num_super)
        center_seg = s / jnp.maximum(cnt, 1.0)[:, None]
    else:
        wf = w.astype(jnp.float32)
        s = jax.ops.segment_sum(pos * wf[:, None], idx, num_segments=num_super)
        ws = jax.ops.segment_sum(wf, idx, num_segments=num_super)
        ws = jnp.where(ws == 0, 1.0, ws)
        center_seg = s / ws[:, None]
    out = (pos - center_seg[idx]) / (diameter_seg[idx][:, None] + EPS_DIAMETER)
    diam = diameter_seg[:, None]
    if log_diameter:
        diam = jnp.log(diam + 1)
    return out, diam


# --------------------------------------------------------------------------------------
# Wrapper
# --------------------------------------------------------------------------------------
def unit_sphere_norm(pos, idx=None, w=None, num_super=None, log_diameter=False, *,
                     max_fused_rows=None, tile_rows=TM_PIPE):
    """UnitSphereNorm forward. pos: (N, D). Returns (normalized_pos, diameter)."""
    if idx is not None:
        return _scatter_forward_jax(pos, idx, w, num_super, log_diameter)

    assert pos.ndim == 2, f"pos must be (N, D), got {pos.shape}"
    n, d = pos.shape
    orig_dtype = pos.dtype
    row_w = d * LANES                 # lane-dense row width; column l <-> coordinate l % d
    n_flat = n * d
    has_w = w is not None

    m_rows = pl.cdiv(n, LANES)        # packed rows; each row holds exactly LANES points
    pad = m_rows * row_w - n_flat     # <= (LANES-1)*d : only the last partial row is padded

    vmem_limit = _tpu_vmem_limit_bytes()

    # VMEM-budget-derived fused threshold.  Accounts for the input block, output block,
    # optional w block and f32 compute temporaries (masking temps only when pad > 0).
    slab_count = 4 + (4 if pad else 0) + (2 if has_w else 0)
    derived_cap = int(vmem_limit * 0.9) // (slab_count * row_w * 4)
    fused_cap = derived_cap if max_fused_rows is None else min(int(max_fused_rows), derived_cap)
    fused = m_rows <= fused_cap

    # ---- wrapper-side lane packing (pure reshape when N % 128 == 0) ----
    x_flat = pos.reshape(-1)
    if pad:
        x_flat = jnp.pad(x_flat, (0, pad))     # only pads the final partial packed row
    x2 = x_flat.reshape(m_rows, row_w)

    w_packed = None
    if has_w:
        # TODO(synk): w is still replicated d-fold to match the packed lane layout; the
        # in-kernel lane expansion (l -> l // d) needs an interleaving relayout with no
        # cheap Mosaic lowering, so the wrapper-side repeat is kept.
        wf = jnp.repeat(w.astype(jnp.float32), d)
        if pad:
            wf = jnp.pad(wf, (0, pad))
        w_packed = wf.reshape(m_rows, row_w)

    if fused:
        coord_row = jnp.tile(jnp.arange(d, dtype=jnp.int32), LANES).reshape(1, row_w)
        kernel = _make_fused_kernel(n_flat=n_flat, n_points=n, d=d, row_w=row_w,
                                    has_w=has_w, log_diameter=log_diameter,
                                    need_mask=bool(pad))
        inputs = [x2] + ([w_packed] if has_w else []) + [coord_row]
        # reuse the freshly padded slab as the output buffer (no-op unless pad > 0)
        alias = {0: 0} if pad else {}
        out2, diam = pl.pallas_call(
            kernel,
            out_shape=(jax.ShapeDtypeStruct((m_rows, row_w), orig_dtype),
                       jax.ShapeDtypeStruct((1, 1), orig_dtype)),
            input_output_aliases=alias,
            compiler_params=pltpu.CompilerParams(vmem_limit_bytes=vmem_limit),
        )(*inputs)
    else:
        # ---- pass 1: per-column min / max / (weighted) sum, per-core accumulators ----
        tm = int(tile_rows) if tile_rows else TM_PIPE
        tm = max(8, (tm // 8) * 8)
        tm = min(tm, ((m_rows + 7) // 8) * 8)          # adaptive: never exceed the row count
        num_blocks = pl.cdiv(m_rows, tm)
        nc = 2 if num_blocks >= 2 else 1               # both TCs on v7x; sequential elsewhere
        bpc = pl.cdiv(num_blocks, nc)
        ragged_last = n_flat < num_blocks * tm * row_w

        def x_map(c, i):
            # clamp the (possibly) out-of-range block of the second core; the kernel skips it
            return (jnp.minimum(c * bpc + i, num_blocks - 1), 0)

        n_out = 4 if has_w else 3
        in_specs = [pl.BlockSpec((tm, row_w), x_map)]
        inputs = [x2]
        if has_w:
            in_specs.append(pl.BlockSpec((tm, row_w), x_map))
            inputs.append(w_packed)

        red = pl.pallas_call(
            _make_reduce_kernel(n_flat=n_flat, row_w=row_w, tm=tm, num_blocks=num_blocks,
                                bpc=bpc, has_w=has_w, ragged_last=ragged_last),
            out_shape=tuple(jax.ShapeDtypeStruct((nc * 8, row_w), jnp.float32)
                            for _ in range(n_out)),
            grid=(nc, bpc),
            in_specs=in_specs,
            out_specs=tuple(pl.BlockSpec((8, row_w), lambda c, i: (c, 0))
                            for _ in range(n_out)),
            compiler_params=pltpu.CompilerParams(
                dimension_semantics=("parallel", "arbitrary"),
                vmem_limit_bytes=vmem_limit),
        )(*inputs)
        if has_w:
            red_min, red_max, red_sum, red_ws = red
        else:
            red_min, red_max, red_sum = red

        # ---- tiny per-coordinate glue: combine cores, fold columns, center, diameter ----
        def rows(a):                       # sublane 0 of each core's 8-row accumulator block
            return a.reshape(nc, 8, row_w)[:, 0, :]

        min_col = jnp.min(rows(red_min), axis=0)
        max_col = jnp.max(rows(red_max), axis=0)
        sum_col = jnp.sum(rows(red_sum), axis=0)
        min_ = jnp.min(min_col.reshape(LANES, d), axis=0)
        max_ = jnp.max(max_col.reshape(LANES, d), axis=0)
        diameter = jnp.max(max_ - min_)
        sums = jnp.sum(sum_col.reshape(LANES, d), axis=0)
        if has_w:
            # coordinate-0 columns carry each weight exactly once (no /d rounding)
            w_total = jnp.sum(jnp.sum(rows(red_ws), axis=0).reshape(LANES, d)[:, 0])
            w_total = jnp.where(w_total == 0.0, 1.0, w_total)
            center = sums / w_total
        else:
            center = sums / float(n)
        inv_scale = 1.0 / (diameter + EPS_DIAMETER)

        center_row = jnp.tile(center, LANES).reshape(1, row_w).astype(jnp.float32)
        scale_row = jnp.broadcast_to(inv_scale, (1, row_w)).astype(jnp.float32)

        # ---- pass 2: lane-dense elementwise normalization (ragged grid, both cores) ----
        out2 = pl.pallas_call(
            _normalize_kernel,
            out_shape=jax.ShapeDtypeStruct((m_rows, row_w), orig_dtype),
            grid=(num_blocks,),
            in_specs=[pl.BlockSpec((tm, row_w), lambda i: (i, 0)),
                      pl.BlockSpec((1, row_w), lambda i: (0, 0)),
                      pl.BlockSpec((1, row_w), lambda i: (0, 0))],
            out_specs=pl.BlockSpec((tm, row_w), lambda i: (i, 0)),
            input_output_aliases={0: 0} if pad else {},
            compiler_params=pltpu.CompilerParams(
                dimension_semantics=("parallel",), vmem_limit_bytes=vmem_limit),
        )(x2, center_row, scale_row)

        dia = diameter
        if log_diameter:
            dia = jnp.log(dia + 1.0)
        diam = dia.reshape(1, 1).astype(orig_dtype)

    # ---- unpack (reshape-only when N % 128 == 0) ----
    if pad:
        out = out2.reshape(-1)[:n_flat].reshape(n, d)
    else:
        out = out2.reshape(n, d)
    return out, diam


# --------------------------------------------------------------------------------------
# Pure-JAX reference and demo
# --------------------------------------------------------------------------------------
def _reference(pos, w=None, log_diameter=False):
    mn = jnp.min(pos, axis=0)
    mx = jnp.max(pos, axis=0)
    diameter = jnp.max(mx - mn)
    if w is None:
        center = jnp.mean(pos, axis=0)
    else:
        wf = w.astype(jnp.float32)
        ws = jnp.sum(wf)
        ws = jnp.where(ws == 0, 1.0, ws)
        center = jnp.sum(pos * wf[:, None], axis=0) / ws
    out = (pos - center[None, :]) / (diameter + EPS_DIAMETER)
    diam = diameter.reshape(1, 1)
    if log_diameter:
        diam = jnp.log(diam + 1)
    return out, diam


if __name__ == "__main__":
    key = jax.random.PRNGKey(0)
    k1, k2, k3, k4 = jax.random.split(key, 4)

    # --- fused full-residency path: small point cloud, D=3 (padded tail, aliased slab) ---
    n, d = 300, 3
    pos = jax.random.normal(k1, (n, d), dtype=jnp.float32) * 2.0 + jnp.array([1.0, -2.0, 0.5])
    fused_fn = jax.jit(unit_sphere_norm)
    out, diam = fused_fn(pos)
    out = jax.block_until_ready(out)
    diam = jax.block_until_ready(diam)
    ref_out, ref_diam = _reference(pos)
    assert out.shape == (n, d) and diam.shape == (1, 1)
    assert jnp.allclose(out, ref_out, atol=1e-4, rtol=1e-4)
    assert jnp.allclose(diam, ref_diam, atol=1e-4, rtol=1e-4)

    # fused path with weighted center + log-normalized diameter
    w = jax.random.uniform(k2, (n,), dtype=jnp.float32)
    fused_w_fn = jax.jit(functools.partial(unit_sphere_norm, log_diameter=True))
    out_w, diam_w = fused_w_fn(pos, w=w)
    jax.block_until_ready(out_w)
    ref_out_w, ref_diam_w = _reference(pos, w=w, log_diameter=True)
    assert jnp.allclose(out_w, ref_out_w, atol=1e-4, rtol=1e-4)
    assert jnp.allclose(diam_w, ref_diam_w, atol=1e-4, rtol=1e-4)

    # fused path, N % 128 == 0 -> copy-free (reshape-only) packing / unpacking
    n_a = 512
    pos_a = jax.random.normal(k4, (n_a, d), dtype=jnp.float32) - 1.5
    out_a, diam_a = fused_fn(pos_a)
    jax.block_until_ready(out_a)
    ref_out_a, ref_diam_a = _reference(pos_a)
    assert jnp.allclose(out_a, ref_out_a, atol=1e-4, rtol=1e-4)
    assert jnp.allclose(diam_a, ref_diam_a, atol=1e-4, rtol=1e-4)

    # --- forced two-pass pipeline path (2-core reduce grid, ragged masked last block) ---
    n2 = 128 * 16 + 37
    pos2 = jax.random.normal(k3, (n2, d), dtype=jnp.float32) * 0.5 + 3.0
    pipe_fn = jax.jit(functools.partial(unit_sphere_norm, max_fused_rows=0, tile_rows=16))
    out2, diam2 = pipe_fn(pos2)
    jax.block_until_ready(out2)
    ref_out2, ref_diam2 = _reference(pos2)
    assert jnp.allclose(out2, ref_out2, atol=1e-4, rtol=1e-4)
    assert jnp.allclose(diam2, ref_diam2, atol=1e-4, rtol=1e-4)

    # pipeline path with weights
    w2 = jax.random.uniform(k2, (n2,), dtype=jnp.float32)
    out3, diam3 = pipe_fn(pos2, w=w2)
    jax.block_until_ready(out3)
    ref_out3, ref_diam3 = _reference(pos2, w=w2)
    assert jnp.allclose(out3, ref_out3, atol=1e-4, rtol=1e-4)
    assert jnp.allclose(diam3, ref_diam3, atol=1e-4, rtol=1e-4)

    print("KERNEL_OK")
</pallas_src>

<mosaic_0001>
module attributes {stable_mosaic.version = 11 : i64} {
  func.func @kernel(%arg0: memref<3x384xf32, #tpu.memory_space<vmem>>, %arg1: memref<1x384xi32, #tpu.memory_space<vmem>>, %arg2: memref<3x384xf32, #tpu.memory_space<vmem>>, %arg3: memref<1x1xf32, #tpu.memory_space<vmem>>) attributes {dimension_semantics = [], scalar_prefetch = 0 : i64, scratch_operands = 0 : i64, tpu.core_type = #tpu.core_type<tc>} {
    %c0 = arith.constant 0 : index
    %c0_0 = arith.constant 0 : index
    %0 = vector.load %arg0[%c0, %c0_0] : memref<3x384xf32, #tpu.memory_space<vmem>>, vector<3x384xf32>
    %c0_1 = arith.constant 0 : index
    %c0_2 = arith.constant 0 : index
    %1 = vector.load %arg1[%c0_1, %c0_2] : memref<1x384xi32, #tpu.memory_space<vmem>>, vector<1x384xi32>
    %2 = tpu.iota {dimensions = array<i32: 0>} : vector<3x384xi32>
    %c384_i32 = arith.constant 384 : i32
    %3 = vector.broadcast %c384_i32 : i32 to vector<3x384xi32>
    %4 = arith.muli %2, %3 : vector<3x384xi32>
    %5 = tpu.iota {dimensions = array<i32: 1>} : vector<3x384xi32>
    %6 = arith.addi %4, %5 : vector<3x384xi32>
    %c900_i32 = arith.constant 900 : i32
    %7 = vector.broadcast %c900_i32 : i32 to vector<3x384xi32>
    %8 = arith.cmpi slt, %6, %7 : vector<3x384xi32>
    %cst = arith.constant 0x7F800000 : f32
    %9 = vector.broadcast %cst : f32 to vector<3x384xf32>
    %10 = arith.select %8, %0, %9 : vector<3x384xi1>, vector<3x384xf32>
    %cst_3 = arith.constant 0xFF800000 : f32
    %11 = vector.broadcast %cst_3 : f32 to vector<3x384xf32>
    %12 = arith.select %8, %0, %11 : vector<3x384xi1>, vector<3x384xf32>
    %cst_4 = arith.constant dense<0x7F800000> : vector<384xf32>
    %13 = vector.multi_reduction <minimumf>, %10, %cst_4 [0] : vector<3x384xf32> to vector<384xf32>
    %14 = vector.shape_cast %13 : vector<384xf32> to vector<1x384xf32>
    %cst_5 = arith.constant dense<0xFF800000> : vector<384xf32>
    %15 = vector.multi_reduction <maximumf>, %12, %cst_5 [0] : vector<3x384xf32> to vector<384xf32>
    %16 = vector.shape_cast %15 : vector<384xf32> to vector<1x384xf32>
    %cst_6 = arith.constant dense<0.000000e+00> : vector<384xf32>
    %17 = vector.multi_reduction <add>, %0, %cst_6 [0] : vector<3x384xf32> to vector<384xf32>
    %18 = vector.shape_cast %17 : vector<384xf32> to vector<1x384xf32>
    %c0_i32 = arith.constant 0 : i32
    %19 = vector.broadcast %c0_i32 : i32 to vector<1x384xi32>
    %20 = arith.cmpi eq, %1, %19 : vector<1x384xi32>
    %cst_7 = arith.constant 0x7F800000 : f32
    %21 = vector.broadcast %cst_7 : f32 to vector<1x384xf32>
    %22 = arith.select %20, %14, %21 : vector<1x384xi1>, vector<1x384xf32>
    %cst_8 = arith.constant dense<0x7F800000> : vector<1xf32>
    %23 = vector.multi_reduction <minimumf>, %22, %cst_8 [1] : vector<1x384xf32> to vector<1xf32>
    %24 = vector.shape_cast %23 : vector<1xf32> to vector<1x1xf32>
    %cst_9 = arith.constant 0xFF800000 : f32
    %25 = vector.broadcast %cst_9 : f32 to vector<1x384xf32>
    %26 = arith.select %20, %16, %25 : vector<1x384xi1>, vector<1x384xf32>
    %cst_10 = arith.constant dense<0xFF800000> : vector<1xf32>
    %27 = vector.multi_reduction <maximumf>, %26, %cst_10 [1] : vector<1x384xf32> to vector<1xf32>
    %28 = vector.shape_cast %27 : vector<1xf32> to vector<1x1xf32>
    %cst_11 = arith.constant 0.000000e+00 : f32
    %29 = vector.broadcast %cst_11 : f32 to vector<1x384xf32>
    %30 = arith.select %20, %18, %29 : vector<1x384xi1>, vector<1x384xf32>
    %cst_12 = arith.constant dense<0.000000e+00> : vector<1xf32>
    %31 = vector.multi_reduction <add>, %30, %cst_12 [1] : vector<1x384xf32> to vector<1xf32>
    %32 = vector.shape_cast %31 : vector<1xf32> to vector<1x1xf32>
    %33 = arith.subf %28, %24 : vector<1x1xf32>
    %c1_i32 = arith.constant 1 : i32
    %34 = vector.broadcast %c1_i32 : i32 to vector<1x384xi32>
    %35 = arith.cmpi eq, %1, %34 : vector<1x384xi32>
    %cst_13 = arith.constant 0x7F800000 : f32
    %36 = vector.broadcast %cst_13 : f32 to vector<1x384xf32>
    %37 = arith.select %35, %14, %36 : vector<1x384xi1>, vector<1x384xf32>
    %cst_14 = arith.constant dense<0x7F800000> : vector<1xf32>
    %38 = vector.multi_reduction <minimumf>, %37, %cst_14 [1] : vector<1x384xf32> to vector<1xf32>
    %39 = vector.shape_cast %38 : vector<1xf32> to vector<1x1xf32>
    %cst_15 = arith.constant 0xFF800000 : f32
    %40 = vector.broadcast %cst_15 : f32 to vector<1x384xf32>
    %41 = arith.select %35, %16, %40 : vector<1x384xi1>, vector<1x384xf32>
    %cst_16 = arith.constant dense<0xFF800000> : vector<1xf32>
    %42 = vector.multi_reduction <maximumf>, %41, %cst_16 [1] : vector<1x384xf32> to vector<1xf32>
    %43 = vector.shape_cast %42 : vector<1xf32> to vector<1x1xf32>
    %cst_17 = arith.constant 0.000000e+00 : f32
    %44 = vector.broadcast %cst_17 : f32 to vector<1x384xf32>
    %45 = arith.select %35, %18, %44 : vector<1x384xi1>, vector<1x384xf32>
    %cst_18 = arith.constant dense<0.000000e+00> : vector<1xf32>
    %46 = vector.multi_reduction <add>, %45, %cst_18 [1] : vector<1x384xf32> to vector<1xf32>
    %47 = vector.shape_cast %46 : vector<1xf32> to vector<1x1xf32>
    %48 = arith.subf %43, %39 : vector<1x1xf32>
    %49 = arith.maximumf %33, %48 : vector<1x1xf32>
    %c2_i32 = arith.constant 2 : i32
    %50 = vector.broadcast %c2_i32 : i32 to vector<1x384xi32>
    %51 = arith.cmpi eq, %1, %50 : vector<1x384xi32>
    %cst_19 = arith.constant 0x7F800000 : f32
    %52 = vector.broadcast %cst_19 : f32 to vector<1x384xf32>
    %53 = arith.select %51, %14, %52 : vector<1x384xi1>, vector<1x384xf32>
    %cst_20 = arith.constant dense<0x7F800000> : vector<1xf32>
    %54 = vector.multi_reduction <minimumf>, %53, %cst_20 [1] : vector<1x384xf32> to vector<1xf32>
    %55 = vector.shape_cast %54 : vector<1xf32> to vector<1x1xf32>
    %cst_21 = arith.constant 0xFF800000 : f32
    %56 = vector.broadcast %cst_21 : f32 to vector<1x384xf32>
    %57 = arith.select %51, %16, %56 : vector<1x384xi1>, vector<1x384xf32>
    %cst_22 = arith.constant dense<0xFF800000> : vector<1xf32>
    %58 = vector.multi_reduction <maximumf>, %57, %cst_22 [1] : vector<1x384xf32> to vector<1xf32>
    %59 = vector.shape_cast %58 : vector<1xf32> to vector<1x1xf32>
    %cst_23 = arith.constant 0.000000e+00 : f32
    %60 = vector.broadcast %cst_23 : f32 to vector<1x384xf32>
    %61 = arith.select %51, %18, %60 : vector<1x384xi1>, vector<1x384xf32>
    %cst_24 = arith.constant dense<0.000000e+00> : vector<1xf32>
    %62 = vector.multi_reduction <add>, %61, %cst_24 [1] : vector<1x384xf32> to vector<1xf32>
    %63 = vector.shape_cast %62 : vector<1xf32> to vector<1x1xf32>
    %64 = arith.subf %59, %55 : vector<1x1xf32>
    %65 = arith.maximumf %49, %64 : vector<1x1xf32>
    %cst_25 = arith.constant 0.00999999977 : f32
    %66 = vector.broadcast %cst_25 : f32 to vector<1x1xf32>
    %67 = arith.addf %65, %66 : vector<1x1xf32>
    %cst_26 = arith.constant 1.000000e+00 : f32
    %68 = vector.broadcast %cst_26 : f32 to vector<1x1xf32>
    %69 = arith.divf %68, %67 : vector<1x1xf32>
    %cst_27 = arith.constant 0.000000e+00 : f32
    %70 = vector.broadcast %cst_27 : f32 to vector<1x384xf32>
    %c0_i32_28 = arith.constant 0 : i32
    %71 = vector.broadcast %c0_i32_28 : i32 to vector<1x384xi32>
    %72 = arith.cmpi eq, %1, %71 : vector<1x384xi32>
    %cst_29 = arith.constant 3.000000e+02 : f32
    %73 = vector.broadcast %cst_29 : f32 to vector<1x1xf32>
    %74 = arith.divf %32, %73 : vector<1x1xf32>
    %75 = vector.shape_cast %74 : vector<1x1xf32> to vector<1x1xf32>
    %76 = vector.broadcast %75 : vector<1x1xf32> to vector<1x384xf32>
    %77 = arith.select %72, %76, %70 : vector<1x384xi1>, vector<1x384xf32>
    %c1_i32_30 = arith.constant 1 : i32
    %78 = vector.broadcast %c1_i32_30 : i32 to vector<1x384xi32>
    %79 = arith.cmpi eq, %1, %78 : vector<1x384xi32>
    %cst_31 = arith.constant 3.000000e+02 : f32
    %80 = vector.broadcast %cst_31 : f32 to vector<1x1xf32>
    %81 = arith.divf %47, %80 : vector<1x1xf32>
    %82 = vector.shape_cast %81 : vector<1x1xf32> to vector<1x1xf32>
    %83 = vector.broadcast %82 : vector<1x1xf32> to vector<1x384xf32>
    %84 = arith.select %79, %83, %77 : vector<1x384xi1>, vector<1x384xf32>
    %c2_i32_32 = arith.constant 2 : i32
    %85 = vector.broadcast %c2_i32_32 : i32 to vector<1x384xi32>
    %86 = arith.cmpi eq, %1, %85 : vector<1x384xi32>
    %cst_33 = arith.constant 3.000000e+02 : f32
    %87 = vector.broadcast %cst_33 : f32 to vector<1x1xf32>
    %88 = arith.divf %63, %87 : vector<1x1xf32>
    %89 = vector.shape_cast %88 : vector<1x1xf32> to vector<1x1xf32>
    %90 = vector.broadcast %89 : vector<1x1xf32> to vector<1x384xf32>
    %91 = arith.select %86, %90, %84 : vector<1x384xi1>, vector<1x384xf32>
    %92 = vector.broadcast %91 : vector<1x384xf32> to vector<3x384xf32>
    %93 = arith.subf %0, %92 : vector<3x384xf32>
    %94 = vector.broadcast %69 : vector<1x1xf32> to vector<3x384xf32>
    %95 = arith.mulf %93, %94 : vector<3x384xf32>
    %c0_34 = arith.constant 0 : index
    %c0_35 = arith.constant 0 : index
    %96 = vector.load %arg2[%c0_34, %c0_35] : memref<3x384xf32, #tpu.memory_space<vmem>>, vector<3x384xf32>
    tpu.vector_store %arg2[%c0_34, %c0_35], %95 {strides = array<i32>} : memref<3x384xf32, #tpu.memory_space<vmem>>, vector<3x384xf32>,
    %c0_36 = arith.constant 0 : index
    %c0_37 = arith.constant 0 : index
    %97 = vector.load %arg3[%c0_36, %c0_37] : memref<1x1xf32, #tpu.memory_space<vmem>>, vector<1x1xf32>
    tpu.vector_store %arg3[%c0_36, %c0_37], %65 {strides = array<i32>} : memref<1x1xf32, #tpu.memory_space<vmem>>, vector<1x1xf32>,
    return
  }
}

</mosaic_0001>

<bundles_post_ra>
// kernel: tile.9
= control target key start
LH: loop header
LB: loop body
LE: loop exit
PB: predicated region body
PF: predicated region fallthrough
CT: control target
= control target key end

     0   :  { %vm9_vm0 = vcmask 7168   ;;  %vm13_vm1 = vcmask 15360   ;;  %s1146_s14 = smov 127   ;;  %s1147_s15 = smov 125   ;;  %vm3_vm2 = vcmask 23552   ;;  %vm16_vm3 = vcmask 1048568   ;;  %s1686_s0 = inlined_call_operand.vmem [shape: s32[128,3], index: 0, kind: input, shape index: {}]   ;;  %s1687_s1 = inlined_call_operand.vmem [shape: s32[1,384], index: 1, kind: output, shape index: {}]  }
   0x1   :  { %v888_v0 = vld [vmem:[%s1686_s0 + $0x55] sm:$0x1]   ;;  %v892_v3 = vld [vmem:[%s1686_s0 + $0x7f] sm:$0x1]   ;;  %v890_v4 = vld [vmem:[%s1686_s0 + $0x2a] sm:$0x1]  }
   0x2   :  { %v889_v1 = vld [vmem:[%s1686_s0 + $0x55] sm:$0x1]   ;;  %34 = vrot.lane.b32.xlu1 %v892_v3, %s1147_s15  ;;  %v891_v5 = vld [vmem:[%s1686_s0 + $0x2a] sm:$0x1]   ;;  %v893_v7 = vld [vmem:[%s1686_s0 + $0x54] sm:$0x1]  }
   0x3   :  { %v10_v2 = vsel %vm9_vm0, %v889_v1, %v888_v0  ;;  %v24_v6 = vsel %vm13_vm1, %v891_v5, %v890_v4  ;;  %s1148_s20 = smov 126   ;;  %s1149_s21 = smov 124   ;;  %v894_v8 = vld [vmem:[%s1686_s0 + $0x29] sm:$0x1]   ;;  %v895_v9 = vld [vmem:[%s1686_s0 + $0x7e] sm:$0x1]  }
   0x4   :  { %11 = vrot.lane.b32.xlu0 %v10_v2, %s1146_s14  ;;  %s1150_s26 = smov 123   ;;  %s1151_s27 = smov 122   ;;  %v896_v10 = vld [vmem:[%s1686_s0 + $0x53] sm:$0x1]   ;;  %v897_v11 = vld [vmem:[%s1686_s0 + $0x28] sm:$0x1]  }
   0x5   :  { %s1152_s3 = smov 121   ;;  %s1153_s4 = smov 120   ;;  %v898_v12 = vld [vmem:[%s1686_s0 + $0x7d] sm:$0x1]   ;;  %v899_v13 = vld [vmem:[%s1686_s0 + $0x52] sm:$0x1]  }
   0x6   :  { %41 = vrot.lane.b32.xlu1 %v893_v7, %s1149_s21  ;;  %s1154_s9 = smov 119   ;;  %s1155_s10 = smov 118   ;;  %v900_v14 = vld [vmem:[%s1686_s0 + $0x27] sm:$0x1]   ;;  %v901_v15 = vld [vmem:[%s1686_s0 + $0x7c] sm:$0x1]  }
   0x7   :  { %s1156_s15 = smov 117   ;;  %s1157_s16 = smov 116   ;;  %v902_v16 = vld [vmem:[%s1686_s0 + $0x51] sm:$0x1]   ;;  %v903_v17 = vld [vmem:[%s1686_s0 + $0x26] sm:$0x1]  }
   0x8   :  { %25 = vrot.lane.b32.xlu0 %v24_v6, %s1148_s20  ;;  %s1158_s21 = smov 115   ;;  %s1159_s22 = smov 114   ;;  %v904_v18 = vld [vmem:[%s1686_s0 + $0x7b] sm:$0x1]   ;;  %v905_v19 = vld [vmem:[%s1686_s0 + $0x50] sm:$0x1]  }
   0x9   :  { %s1161_s28 = smov 112   ;;  %v906_v20 = vld [vmem:[%s1686_s0 + $0x25] sm:$0x1]   ;;  %v907_v21 = vld [vmem:[%s1686_s0 + $0x7a] sm:$0x1]   ;;  %s1162_s6 = smov 111  }
   0xa   :  { %54 = vrot.lane.b32.xlu1 %v895_v9, %s1151_s27  ;;  %s1160_s27 = smov 113   ;;  %v2_v22 = vld [vmem:[%s1686_s0] sm:$0x1]   ;;  %s1163_s7 = smov 110   ;;  %v908_v23 = vld [vmem:[%s1686_s0 + $0x4f] sm:$0x1]  }
   0xb   :  { %4 = vst.msk [vmem:[#allocation0] sm:$0x1] %vm3_vm2, %v2_v22   ;;  %v909_v24 = vld [vmem:[%s1686_s0 + $0x24] sm:$0x1]   ;;  %s1164_s12 = smov 109   ;;  %s1165_s13 = smov 108  }
   0xc   :  { %48 = vrot.lane.b32.xlu0 %v894_v8, %s1150_s26  ;;  %v910_v25 = vld [vmem:[%s1686_s0 + $0x79] sm:$0x1]   ;;  %v911_v26 = vld [vmem:[%s1686_s0 + $0x4e] sm:$0x1]   ;;  %s1166_s18 = smov 107   ;;  %s1167_s19 = smov 106  }
   0xd   :  { %v912_v27 = vld [vmem:[%s1686_s0 + $0x23] sm:$0x1]   ;;  %v913_v28 = vld [vmem:[%s1686_s0 + $0x78] sm:$0x1]   ;;  %s1168_s24 = smov 105   ;;  %s1169_s25 = smov 104  }
   0xe   :  { %68 = vrot.lane.b32.xlu1 %v897_v11, %s1153_s4  ;;  %v914_v29 = vld [vmem:[%s1686_s0 + $0x4d] sm:$0x1]   ;;  %v915_v30 = vld [vmem:[%s1686_s0 + $0x22] sm:$0x1]   ;;  %s1170_s30 = smov 103   ;;  %s1171_s2 = smov 102  }
   0xf   :  { %v916_v31 = vld [vmem:[%s1686_s0 + $0x77] sm:$0x1]   ;;  %v917_v32 = vld [vmem:[%s1686_s0 + $0x4c] sm:$0x1]   ;;  %s1173_s8 = smov 100   ;;  %s1175_s14 = smov 98  }
  0x10   :  { %61 = vrot.lane.b32.xlu0 %v896_v10, %s1152_s3  ;;  %v918_v33 = vld [vmem:[%s1686_s0 + $0x21] sm:$0x1]   ;;  %v919_v34 = vld [vmem:[%s1686_s0 + $0x76] sm:$0x1]   ;;  %v920_v35 = vld [vmem:[%s1686_s0 + $0x4b] sm:$0x1]  }
  0x11   :  { %v921_v36 = vld [vmem:[%s1686_s0 + $0x20] sm:$0x1]   ;;  %s1177_s20 = smov 96   ;;  %v922_v37 = vld [vmem:[%s1686_s0 + $0x75] sm:$0x1]   ;;  %s1179_s26 = smov 94  }
  0x12   :  { %81 = vrot.lane.b32.xlu1 %v899_v13, %s1155_s10  ;;  %v923_v38 = vld [vmem:[%s1686_s0 + $0x4a] sm:$0x1]   ;;  %v924_v39 = vld [vmem:[%s1686_s0 + $0x1f] sm:$0x1]   ;;  %v925_v40 = vld [vmem:[%s1686_s0 + $0x74] sm:$0x1]  }
  0x13   :  { %s1181_s3 = smov 92   ;;  %v926_v41 = vld [vmem:[%s1686_s0 + $0x49] sm:$0x1]   ;;  %v927_v42 = vld [vmem:[%s1686_s0 + $0x1e] sm:$0x1]   ;;  %s1191_s4 = smov 82  }
  0x14   :  { %74 = vrot.lane.b32.xlu0 %v898_v12, %s1154_s9  ;;  %s1183_s9 = smov 90   ;;  %v928_v43 = vld [vmem:[%s1686_s0 + $0x73] sm:$0x1]   ;;  %v929_v44 = vld [vmem:[%s1686_s0 + $0x48] sm:$0x1]   ;;  %s1193_s10 = smov 80  }
  0x15   :  { %v930_v45 = vld [vmem:[%s1686_s0 + $0x1d] sm:$0x1]   ;;  %v931_v46 = vld [vmem:[%s1686_s0 + $0x72] sm:$0x1]   ;;  %v932_v47 = vld [vmem:[%s1686_s0 + $0x47] sm:$0x1]  }
  0x16   :  { %94 = vrot.lane.b32.xlu1 %v901_v15, %s1157_s16  ;;  %v933_v48 = vld [vmem:[%s1686_s0 + $0x1c] sm:$0x1]   ;;  %v934_v49 = vld [vmem:[%s1686_s0 + $0x71] sm:$0x1]   ;;  %v935_v50 = vld [vmem:[%s1686_s0 + $0x46] sm:$0x1]  }
  0x17   :  { %v936_v51 = vld [vmem:[%s1686_s0 + $0x1b] sm:$0x1]   ;;  %v937_v52 = vld [vmem:[%s1686_s0 + $0x70] sm:$0x1]   ;;  %v938_v53 = vld [vmem:[%s1686_s0 + $0x45] sm:$0x1]  }
  0x18   :  { %88 = vrot.lane.b32.xlu0 %v900_v14, %s1156_s15  ;;  %s1185_s15 = smov 88   ;;  %v939_v54 = vld [vmem:[%s1686_s0 + $0x1a] sm:$0x1]   ;;  %s1195_s16 = smov 78   ;;  %v940_v55 = vld [vmem:[%s1686_s0 + $0x6f] sm:$0x1]  }
  0x19   :  { %v941_v56 = vld [vmem:[%s1686_s0 + $0x44] sm:$0x1]   ;;  %v942_v57 = vld [vmem:[%s1686_s0 + $0x19] sm:$0x1]   ;;  %v943_v58 = vld [vmem:[%s1686_s0 + $0x6e] sm:$0x1]  }
  0x1a   :  { %108 = vrot.lane.b32.xlu1 %v903_v17, %s1159_s22  ;;  %s1197_s22 = smov 76   ;;  %v944_v59 = vld [vmem:[%s1686_s0 + $0x43] sm:$0x1]   ;;  %v945_v60 = vld [vmem:[%s1686_s0 + $0x18] sm:$0x1]   ;;  %s1201_s5 = smov 72  }
  0x1b   :  { %v946_v61 = vld [vmem:[%s1686_s0 + $0x6d] sm:$0x1]   ;;  %v947_v62 = vld [vmem:[%s1686_s0 + $0x42] sm:$0x1]   ;;  %s1203_s11 = smov 70   ;;  %vm36_vm4 = vcmask 1048552  }
  0x1c   :  { %101 = vrot.lane.b32.xlu0 %v902_v16, %s1158_s21  ;;  %s1187_s21 = smov 86   ;;  %v948_v63 = vld [vmem:[%s1686_s0 + $0x17] sm:$0x1]   ;;  %v949_v0 = vld [vmem:[%s1686_s0 + $0x6c] sm:$0x1]   ;;  %vm30_vm5 = vcmask 1048560  }
  0x1d   :  { %s1205_s17 = smov 68   ;;  %v950_v3 = vld [vmem:[%s1686_s0 + $0x41] sm:$0x1]   ;;  %vm43_vm6 = vcmask 1040352   ;;  %v951_v4 = vld [vmem:[%s1686_s0 + $0x16] sm:$0x1]  }
  0x1e   :  { %121 = vrot.lane.b32.xlu1 %v905_v19, %s1161_s28  ;;  %s1199_s28 = smov 74   ;;  %vm50_vm7 = vcmask 1032152   ;;  %s1207_s23 = smov 66   ;;  %vm56_vm8 = vcmask 1023952   ;;  %v952_v7 = vld [vmem:[%s1686_s0 + $0x6b] sm:$0x1]  }
  0x1f   :  { %v953_v8 = vld [vmem:[%s1686_s0 + $0x40] sm:$0x1]   ;;  %vm63_vm9 = vcmask 1015752   ;;  %s1209_s29 = smov 64   ;;  %vm70_vm10 = vcmask 1007552   ;;  %vm76_vm11 = vcmask 999352  }
  0x20   :  { %114 = vrot.lane.b32.xlu0 %v904_v18, %s1160_s27  ;;  %s1189_s27 = smov 84   ;;  %v954_v11 = vld [vmem:[%s1686_s0 + $0x15] sm:$0x1]   ;;  %v955_v12 = vld [vmem:[%s1686_s0 + $0x6a] sm:$0x1]   ;;  %vm83_vm12 = vcmask 991152  }
  0x21   :  { %v956_v15 = vld [vmem:[%s1686_s0 + $0x3f] sm:$0x1]   ;;  %v957_v16 = vld [vmem:[%s1686_s0 + $0x14] sm:$0x1]   ;;  %vm90_vm13 = vcmask 982952   ;;  %vm96_vm14 = vcmask 974752  }
  0x22   :  { %134 = vrot.lane.b32.xlu1 %v907_v21, %s1163_s7  ;;  %s1172_s7 = smov 101   ;;  %v958_v19 = vld [vmem:[%s1686_s0 + $0x69] sm:$0x1]   ;;  %vm103_vm15 = vcmask 966552   ;;  %vm123_vm2 = vcmask 941952  }
  0x24   :  { %128 = vrot.lane.b32.xlu0 %v906_v20, %s1162_s6  ;;  %s1211_s6 = smov 62   ;;  %v959_v20 = vld [vmem:[%s1686_s0 + $0x3e] sm:$0x1]  }
  0x26   :  { %148 = vrot.lane.b32.xlu1 %v909_v24, %s1165_s13  ;;  %s1174_s13 = smov 99   ;;  %v961_v24 = vld [vmem:[%s1686_s0 + $0x68] sm:$0x1]  }
  0x28   :  { %141 = vrot.lane.b32.xlu0 %v908_v23, %s1164_s12  ;;  %s1213_s12 = smov 60   ;;  %v960_v23 = vld [vmem:[%s1686_s0 + $0x13] sm:$0x1]  }
  0x2a   :  { %161 = vrot.lane.b32.xlu1 %v911_v26, %s1167_s19  ;;  %s1176_s19 = smov 97  }
  0x2c   :  { %154 = vrot.lane.b32.xlu0 %v910_v25, %s1166_s18  ;;  %s1215_s18 = smov 58  }
  0x2e   :  { %174 = vrot.lane.b32.xlu1 %v913_v28, %s1169_s25  ;;  %s1178_s25 = smov 95   ;;  %v963_v28 = vld [vmem:[%s1686_s0 + $0x12] sm:$0x1]  }
  0x30   :  { %168 = vrot.lane.b32.xlu0 %v912_v27, %s1168_s24  ;;  %s1217_s24 = smov 56   ;;  %v962_v27 = vld [vmem:[%s1686_s0 + $0x3d] sm:$0x1]  }
  0x32   :  { %188 = vrot.lane.b32.xlu1 %v915_v30, %s1171_s2  ;;  %s1180_s2 = smov 93  }
  0x34   :  { %181 = vrot.lane.b32.xlu0 %v914_v29, %s1170_s30  ;;  %s1219_s30 = smov 54  }
  0x36   :  { %201 = vrot.lane.b32.xlu1 %v917_v32, %s1173_s8  ;;  %s1182_s8 = smov 91   ;;  %v965_v32 = vld [vmem:[%s1686_s0 + $0x3c] sm:$0x1]  }
  0x38   :  { %194 = vrot.lane.b32.xlu0 %v916_v31, %s1172_s7  ;;  %v964_v31 = vld [vmem:[%s1686_s0 + $0x67] sm:$0x1]   ;;  %s1221_s7 = smov 52  }
  0x3a   :  { %214 = vrot.lane.b32.xlu1 %v919_v34, %s1175_s14  ;;  %s1184_s14 = smov 89  }
  0x3c   :  { %208 = vrot.lane.b32.xlu0 %v918_v33, %s1174_s13  ;;  %s1223_s13 = smov 50  }
  0x3e   :  { %228 = vrot.lane.b32.xlu1 %v921_v36, %s1177_s20  ;;  %s1186_s20 = smov 87   ;;  %v967_v36 = vld [vmem:[%s1686_s0 + $0x66] sm:$0x1]  }
  0x40   :  { %221 = vrot.lane.b32.xlu0 %v920_v35, %s1176_s19  ;;  %v966_v35 = vld [vmem:[%s1686_s0 + $0x11] sm:$0x1]   ;;  %s1225_s19 = smov 48  }
  0x42   :  { %241 = vrot.lane.b32.xlu1 %v923_v38, %s1179_s26  ;;  %s1188_s26 = smov 85  }
  0x44   :  { %234 = vrot.lane.b32.xlu0 %v922_v37, %s1178_s25  ;;  %s1227_s25 = smov 46  }
  0x46   :  { %254 = vrot.lane.b32.xlu1 %v925_v40, %s1181_s3  ;;  %s1190_s3 = smov 83   ;;  %v969_v40 = vld [vmem:[%s1686_s0 + $0x10] sm:$0x1]  }
  0x48   :  { %248 = vrot.lane.b32.xlu0 %v924_v39, %s1180_s2  ;;  %v968_v39 = vld [vmem:[%s1686_s0 + $0x3b] sm:$0x1]   ;;  %s1229_s2 = smov 44  }
  0x4a   :  { %268 = vrot.lane.b32.xlu1 %v927_v42, %s1183_s9  ;;  %s1192_s9 = smov 81  }
  0x4c   :  { %261 = vrot.lane.b32.xlu0 %v926_v41, %s1182_s8  ;;  %s1231_s8 = smov 42  }
  0x4e   :  { %281 = vrot.lane.b32.xlu1 %v929_v44, %s1185_s15  ;;  %s1194_s15 = smov 79   ;;  %v971_v44 = vld [vmem:[%s1686_s0 + $0x3a] sm:$0x1]  }
  0x50   :  { %274 = vrot.lane.b32.xlu0 %v928_v43, %s1184_s14  ;;  %v970_v43 = vld [vmem:[%s1686_s0 + $0x65] sm:$0x1]   ;;  %s1233_s14 = smov 40  }
  0x52   :  { %294 = vrot.lane.b32.xlu1 %v931_v46, %s1187_s21  ;;  %s1196_s21 = smov 77  }
  0x54   :  { %288 = vrot.lane.b32.xlu0 %v930_v45, %s1186_s20  ;;  %s1235_s20 = smov 38  }
  0x56   :  { %308 = vrot.lane.b32.xlu1 %v933_v48, %s1189_s27  ;;  %s1198_s27 = smov 75   ;;  %v973_v48 = vld [vmem:[%s1686_s0 + $0x64] sm:$0x1]  }
  0x58   :  { %301 = vrot.lane.b32.xlu0 %v932_v47, %s1188_s26  ;;  %v972_v47 = vld [vmem:[%s1686_s0 + $0xf] sm:$0x1]   ;;  %s1237_s26 = smov 36  }
  0x5a   :  { %321 = vrot.lane.b32.xlu1 %v935_v50, %s1191_s4  ;;  %s1200_s4 = smov 73  }
  0x5c   :  { %314 = vrot.lane.b32.xlu0 %v934_v49, %s1190_s3  ;;  %s1239_s3 = smov 34  }
  0x5e   :  { %334 = vrot.lane.b32.xlu1 %v937_v52, %s1193_s10  ;;  %s1202_s10 = smov 71   ;;  %v975_v52 = vld [vmem:[%s1686_s0 + $0xe] sm:$0x1]  }
  0x60   :  { %328 = vrot.lane.b32.xlu0 %v936_v51, %s1192_s9  ;;  %v974_v51 = vld [vmem:[%s1686_s0 + $0x39] sm:$0x1]   ;;  %s1241_s9 = smov 32  }
  0x62   :  { %348 = vrot.lane.b32.xlu1 %v939_v54, %s1195_s16  ;;  %s1204_s16 = smov 69  }
  0x64   :  { %341 = vrot.lane.b32.xlu0 %v938_v53, %s1194_s15  ;;  %s1243_s15 = smov 30  }
  0x66   :  { %361 = vrot.lane.b32.xlu1 %v941_v56, %s1197_s22  ;;  %s1206_s22 = smov 67   ;;  %v977_v56 = vld [vmem:[%s1686_s0 + $0x38] sm:$0x1]  }
  0x68   :  { %354 = vrot.lane.b32.xlu0 %v940_v55, %s1196_s21  ;;  %v976_v55 = vld [vmem:[%s1686_s0 + $0x63] sm:$0x1]   ;;  %s1245_s21 = smov 28  }
  0x6a   :  { %374 = vrot.lane.b32.xlu1 %v943_v58, %s1199_s28  ;;  %s1208_s28 = smov 65  }
  0x6c   :  { %368 = vrot.lane.b32.xlu0 %v942_v57, %s1198_s27  ;;  %s1247_s27 = smov 26  }
  0x6e   :  { %388 = vrot.lane.b32.xlu1 %v945_v60, %s1201_s5  ;;  %s1210_s5 = smov 63   ;;  %v979_v60 = vld [vmem:[%s1686_s0 + $0x62] sm:$0x1]  }
  0x70   :  { %381 = vrot.lane.b32.xlu0 %v944_v59, %s1200_s4  ;;  %v978_v59 = vld [vmem:[%s1686_s0 + $0xd] sm:$0x1]   ;;  %s1249_s4 = smov 24  }
  0x72   :  { %401 = vrot.lane.b32.xlu1 %v947_v62, %s1203_s11  ;;  %s1212_s11 = smov 61  }
  0x74   :  { %394 = vrot.lane.b32.xlu0 %v946_v61, %s1202_s10  ;;  %v35_v2 = vpop.permute.xlu1 %34   ;;  %s1251_s10 = smov 22  }
  0x76   :  { %v12_v1 = vpop.permute.xlu0 %11   ;;  %414 = vrot.lane.b32.xlu1 %v949_v0, %s1205_s17  ;;  %s1214_s17 = smov 59   ;;  %v981_v0 = vld [vmem:[%s1686_s0 + $0xc] sm:$0x1]  }
  0x77   :  { %15 = vst.msk [vmem:[#allocation0 + $0x10] sm:$0x1] %vm13_vm1, %v12_v1   ;;  %vm116_vm1 = vcmask 950152  }
  0x78   :  { %18 = vst.msk [vmem:[#allocation0 + $0x8] sm:$0x1] %vm16_vm3, %v12_v1   ;;  %408 = vrot.lane.b32.xlu0 %v948_v63, %s1204_s16  ;;  %v42_v6 = vpop.permute.xlu1 %41   ;;  %vm130_vm3 = vcmask 933752   ;;  %v980_v63 = vld [vmem:[%s1686_s0 + $0x37] sm:$0x1]   ;;  %s1253_s16 = smov 20  }
  0x79   :  { %38 = vst.msk [vmem:[#allocation0 + $0x10] sm:$0x1] %vm36_vm4, %v35_v2   ;;  %vm136_vm4 = vcmask 925552  }
  0x7a   :  { %v26_v5 = vpop.permute.xlu0 %25   ;;  %428 = vrot.lane.b32.xlu1 %v951_v4, %s1207_s23  ;;  %s1216_s23 = smov 57   ;;  %v983_v4 = vld [vmem:[%s1686_s0 + $0x36] sm:$0x1]  }
  0x7b   :  { %29 = vst.msk [vmem:[#allocation0 + $0x8] sm:$0x1] %vm9_vm0, %v26_v5   ;;  %vm110_vm0 = vcmask 958352  }
  0x7c   :  { %31 = vst.msk [vmem:[#allocation0] sm:$0x1] %vm30_vm5, %v26_v5   ;;  %421 = vrot.lane.b32.xlu0 %v950_v3, %s1206_s22  ;;  %v55_v10 = vpop.permute.xlu1 %54   ;;  %vm143_vm5 = vcmask 917352   ;;  %v982_v3 = vld [vmem:[%s1686_s0 + $0x61] sm:$0x1]   ;;  %s1255_s22 = smov 18  }
  0x7d   :  { %45 = vst.msk [vmem:[#allocation0 + $0x8] sm:$0x1] %vm43_vm6, %v42_v6   ;;  %vm150_vm6 = vcmask 909152  }
  0x7e   :  { %v49_v9 = vpop.permute.xlu0 %48   ;;  %58 = vst.msk [vmem:[#allocation0 + $0x10] sm:$0x1] %vm56_vm8, %v55_v10   ;;  %441 = vrot.lane.b32.xlu1 %v953_v8, %s1209_s29  ;;  %s1218_s29 = smov 55   ;;  %vm163_vm8 = vcmask 892752   ;;  %v985_v8 = vld [vmem:[%s1686_s0 + $0x60] sm:$0x1]  }
  0x7f   :  { %51 = vst.msk [vmem:[#allocation0] sm:$0x1] %vm50_vm7, %v49_v9   ;;  %vm156_vm7 = vcmask 900952  }
  0x80   :  { %434 = vrot.lane.b32.xlu0 %v952_v7, %s1208_s28  ;;  %v69_v14 = vpop.permute.xlu1 %68   ;;  %v984_v7 = vld [vmem:[%s1686_s0 + $0xb] sm:$0x1]   ;;  %s1257_s28 = smov 16  }
  0x81   :  { %71 = vst.msk [vmem:[#allocation0] sm:$0x1] %vm70_vm10, %v69_v14   ;;  %vm176_vm10 = vcmask 876352  }
  0x82   :  { %v62_v13 = vpop.permute.xlu0 %61   ;;  %454 = vrot.lane.b32.xlu1 %v955_v12, %s1211_s6  ;;  %s1220_s6 = smov 53   ;;  %v987_v12 = vld [vmem:[%s1686_s0 + $0xa] sm:$0x1]  }
  0x83   :  { %65 = vst.msk [vmem:[#allocation0 + $0x8] sm:$0x1] %vm63_vm9, %v62_v13   ;;  %vm170_vm9 = vcmask 884552  }
  0x84   :  { %448 = vrot.lane.b32.xlu0 %v954_v11, %s1210_s5  ;;  %v82_v18 = vpop.permute.xlu1 %81   ;;  %v986_v11 = vld [vmem:[%s1686_s0 + $0x35] sm:$0x1]   ;;  %s1259_s5 = smov 14  }
  0x85   :  { %85 = vst.msk [vmem:[#allocation0 + $0x8] sm:$0x1] %vm83_vm12, %v82_v18   ;;  %vm190_vm12 = vcmask 859952  }
  0x86   :  { %v75_v17 = vpop.permute.xlu0 %74   ;;  %468 = vrot.lane.b32.xlu1 %v957_v16, %s1213_s12  ;;  %s1222_s12 = smov 51   ;;  %v989_v16 = vld [vmem:[%s1686_s0 + $0x34] sm:$0x1]  }
  0x87   :  { %78 = vst.msk [vmem:[#allocation0 + $0x10] sm:$0x1] %vm76_vm11, %v75_v17   ;;  %vm183_vm11 = vcmask 868152  }
  0x88   :  { %461 = vrot.lane.b32.xlu0 %v956_v15, %s1212_s11  ;;  %v95_v22 = vpop.permute.xlu1 %94   ;;  %v988_v15 = vld [vmem:[%s1686_s0 + $0x5f] sm:$0x1]   ;;  %s1261_s11 = smov 12  }
  0x89   :  { %98 = vst.msk [vmem:[#allocation0 + $0x10] sm:$0x1] %vm96_vm14, %v95_v22   ;;  %vm203_vm14 = vcmask 843552  }
  0x8a   :  { %v89_v21 = vpop.permute.xlu0 %88   ;;  %481 = vrot.lane.b32.xlu1 %v959_v20, %s1215_s18  ;;  %s1224_s18 = smov 49   ;;  %v991_v20 = vld [vmem:[%s1686_s0 + $0x5e] sm:$0x1]  }
  0x8b   :  { %91 = vst.msk [vmem:[#allocation0] sm:$0x1] %vm90_vm13, %v89_v21   ;;  %vm196_vm13 = vcmask 851752  }
  0x8c   :  { %474 = vrot.lane.b32.xlu0 %v958_v19, %s1214_s17  ;;  %v109_v26 = vpop.permute.xlu1 %108   ;;  %v990_v19 = vld [vmem:[%s1686_s0 + $0x9] sm:$0x1]   ;;  %s1263_s17 = smov 10  }
  0x8d   :  { %111 = vst.msk [vmem:[#allocation0] sm:$0x1] %vm110_vm0, %v109_v26   ;;  %vm216_vm0 = vcmask 827152  }
  0x8e   :  { %v102_v25 = vpop.permute.xlu0 %101   ;;  %494 = vrot.lane.b32.xlu1 %v961_v24, %s1217_s24  ;;  %s1226_s24 = smov 47   ;;  %v993_v24 = vld [vmem:[%s1686_s0 + $0x8] sm:$0x1]  }
  0x8f   :  { %105 = vst.msk [vmem:[#allocation0 + $0x8] sm:$0x1] %vm103_vm15, %v102_v25   ;;  %vm210_vm15 = vcmask 835352  }
  0x90   :  { %488 = vrot.lane.b32.xlu0 %v960_v23, %s1216_s23  ;;  %v122_v30 = vpop.permute.xlu1 %121   ;;  %v992_v23 = vld [vmem:[%s1686_s0 + $0x33] sm:$0x1]   ;;  %s1265_s23 = smov 8  }
  0x91   :  { %125 = vst.msk [vmem:[#allocation0 + $0x8] sm:$0x1] %vm123_vm2, %v122_v30   ;;  %vm230_vm2 = vcmask 810752  }
  0x92   :  { %v115_v29 = vpop.permute.xlu0 %114   ;;  %508 = vrot.lane.b32.xlu1 %v963_v28, %s1219_s30  ;;  %s1228_s30 = smov 45   ;;  %v995_v28 = vld [vmem:[%s1686_s0 + $0x32] sm:$0x1]  }
  0x93   :  { %118 = vst.msk [vmem:[#allocation0 + $0x10] sm:$0x1] %vm116_vm1, %v115_v29   ;;  %vm223_vm1 = vcmask 818952  }
  0x94   :  { %501 = vrot.lane.b32.xlu0 %v962_v27, %s1218_s29  ;;  %v135_v34 = vpop.permute.xlu1 %134   ;;  %v994_v27 = vld [vmem:[%s1686_s0 + $0x5d] sm:$0x1]   ;;  %s1267_s29 = smov 6  }
  0x95   :  { %138 = vst.msk [vmem:[#allocation0 + $0x10] sm:$0x1] %vm136_vm4, %v135_v34   ;;  %vm243_vm4 = vcmask 794352  }
  0x96   :  { %v129_v33 = vpop.permute.xlu0 %128   ;;  %521 = vrot.lane.b32.xlu1 %v965_v32, %s1221_s7  ;;  %s1230_s7 = smov 43   ;;  %v997_v32 = vld [vmem:[%s1686_s0 + $0x5c] sm:$0x1]  }
  0x97   :  { %131 = vst.msk [vmem:[#allocation0] sm:$0x1] %vm130_vm3, %v129_v33   ;;  %vm236_vm3 = vcmask 802552  }
  0x98   :  { %514 = vrot.lane.b32.xlu0 %v964_v31, %s1220_s6  ;;  %v149_v38 = vpop.permute.xlu1 %148   ;;  %v996_v31 = vld [vmem:[%s1686_s0 + $0x7] sm:$0x1]   ;;  %s1269_s6 = smov 4  }
  0x99   :  { %151 = vst.msk [vmem:[#allocation0] sm:$0x1] %vm150_vm6, %v149_v38   ;;  %vm256_vm6 = vcmask 777952  }
  0x9a   :  { %v142_v37 = vpop.permute.xlu0 %141   ;;  %534 = vrot.lane.b32.xlu1 %v967_v36, %s1223_s13  ;;  %s1232_s13 = smov 41   ;;  %v999_v36 = vld [vmem:[%s1686_s0 + $0x6] sm:$0x1]  }
  0x9b   :  { %145 = vst.msk [vmem:[#allocation0 + $0x8] sm:$0x1] %vm143_vm5, %v142_v37   ;;  %vm250_vm5 = vcmask 786152  }
  0x9c   :  { %528 = vrot.lane.b32.xlu0 %v966_v35, %s1222_s12  ;;  %v162_v42 = vpop.permute.xlu1 %161   ;;  %v998_v35 = vld [vmem:[%s1686_s0 + $0x31] sm:$0x1]   ;;  %s1271_s12 = smov 2  }
  0x9d   :  { %165 = vst.msk [vmem:[#allocation0 + $0x8] sm:$0x1] %vm163_vm8, %v162_v42   ;;  %vm270_vm8 = vcmask 761552  }
  0x9e   :  { %v155_v41 = vpop.permute.xlu0 %154   ;;  %548 = vrot.lane.b32.xlu1 %v969_v40, %s1225_s19  ;;  %s1234_s19 = smov 39   ;;  %v1001_v40 = vld [vmem:[%s1686_s0 + $0x30] sm:$0x1]  }
  0x9f   :  { %158 = vst.msk [vmem:[#allocation0 + $0x10] sm:$0x1] %vm156_vm7, %v155_v41   ;;  %vm263_vm7 = vcmask 769752  }
  0xa0   :  { %541 = vrot.lane.b32.xlu0 %v968_v39, %s1224_s18  ;;  %v175_v46 = vpop.permute.xlu1 %174   ;;  %v1000_v39 = vld [vmem:[%s1686_s0 + $0x5b] sm:$0x1]  }
  0xa1   :  { %178 = vst.msk [vmem:[#allocation0 + $0x10] sm:$0x1] %vm176_vm10, %v175_v46   ;;  %vm283_vm10 = vcmask 745152  }
  0xa2   :  { %v169_v45 = vpop.permute.xlu0 %168   ;;  %561 = vrot.lane.b32.xlu1 %v971_v44, %s1227_s25  ;;  %s1236_s25 = smov 37   ;;  %v1003_v44 = vld [vmem:[%s1686_s0 + $0x5a] sm:$0x1]  }
  0xa3   :  { %171 = vst.msk [vmem:[#allocation0] sm:$0x1] %vm170_vm9, %v169_v45   ;;  %vm276_vm9 = vcmask 753352  }
  0xa4   :  { %554 = vrot.lane.b32.xlu0 %v970_v43, %s1226_s24  ;;  %v189_v50 = vpop.permute.xlu1 %188   ;;  %v1002_v43 = vld [vmem:[%s1686_s0 + $0x5] sm:$0x1]  }
  0xa5   :  { %191 = vst.msk [vmem:[#allocation0] sm:$0x1] %vm190_vm12, %v189_v50   ;;  %vm296_vm12 = vcmask 728752  }
  0xa6   :  { %v182_v49 = vpop.permute.xlu0 %181   ;;  %574 = vrot.lane.b32.xlu1 %v973_v48, %s1229_s2  ;;  %s1238_s2 = smov 35   ;;  %v1005_v48 = vld [vmem:[%s1686_s0 + $0x4] sm:$0x1]  }
  0xa7   :  { %185 = vst.msk [vmem:[#allocation0 + $0x8] sm:$0x1] %vm183_vm11, %v182_v49   ;;  %vm290_vm11 = vcmask 736952  }
  0xa8   :  { %568 = vrot.lane.b32.xlu0 %v972_v47, %s1228_s30  ;;  %v202_v54 = vpop.permute.xlu1 %201   ;;  %v1004_v47 = vld [vmem:[%s1686_s0 + $0x2f] sm:$0x1]  }
  0xa9   :  { %205 = vst.msk [vmem:[#allocation0 + $0x8] sm:$0x1] %vm203_vm14, %v202_v54   ;;  %vm310_vm14 = vcmask 712352  }
  0xaa   :  { %v195_v53 = vpop.permute.xlu0 %194   ;;  %588 = vrot.lane.b32.xlu1 %v975_v52, %s1231_s8  ;;  %s1240_s8 = smov 33   ;;  %v1007_v52 = vld [vmem:[%s1686_s0 + $0x2e] sm:$0x1]  }
  0xab   :  { %198 = vst.msk [vmem:[#allocation0 + $0x10] sm:$0x1] %vm196_vm13, %v195_v53   ;;  %vm303_vm13 = vcmask 720552  }
  0xac   :  { %581 = vrot.lane.b32.xlu0 %v974_v51, %s1230_s7  ;;  %v215_v58 = vpop.permute.xlu1 %214   ;;  %v1006_v51 = vld [vmem:[%s1686_s0 + $0x59] sm:$0x1]  }
  0xad   :  { %218 = vst.msk [vmem:[#allocation0 + $0x10] sm:$0x1] %vm216_vm0, %v215_v58   ;;  %vm323_vm0 = vcmask 695952  }
  0xae   :  { %v209_v57 = vpop.permute.xlu0 %208   ;;  %601 = vrot.lane.b32.xlu1 %v977_v56, %s1233_s14  ;;  %s1242_s14 = smov 31   ;;  %v1009_v56 = vld [vmem:[%s1686_s0 + $0x58] sm:$0x1]  }
  0xaf   :  { %211 = vst.msk [vmem:[#allocation0] sm:$0x1] %vm210_vm15, %v209_v57   ;;  %vm316_vm15 = vcmask 704152  }
  0xb0   :  { %594 = vrot.lane.b32.xlu0 %v976_v55, %s1232_s13  ;;  %v229_v62 = vpop.permute.xlu1 %228   ;;  %v1008_v55 = vld [vmem:[%s1686_s0 + $0x3] sm:$0x1]  }
  0xb1   :  { %231 = vst.msk [vmem:[#allocation0] sm:$0x1] %vm230_vm2, %v229_v62   ;;  %vm336_vm2 = vcmask 679552  }
  0xb2   :  { %v222_v61 = vpop.permute.xlu0 %221   ;;  %614 = vrot.lane.b32.xlu1 %v979_v60, %s1235_s20  ;;  %s1244_s20 = smov 29   ;;  %v1011_v60 = vld [vmem:[%s1686_s0 + $0x2] sm:$0x1]  }
  0xb3   :  { %225 = vst.msk [vmem:[#allocation0 + $0x8] sm:$0x1] %vm223_vm1, %v222_v61   ;;  %vm330_vm1 = vcmask 687752  }
  0xb4   :  { %608 = vrot.lane.b32.xlu0 %v978_v59, %s1234_s19  ;;  %v242_v2 = vpop.permute.xlu1 %241   ;;  %v1010_v59 = vld [vmem:[%s1686_s0 + $0x2d] sm:$0x1]  }
  0xb5   :  { %245 = vst.msk [vmem:[#allocation0 + $0x8] sm:$0x1] %vm243_vm4, %v242_v2   ;;  %vm350_vm4 = vcmask 663152  }
  0xb6   :  { %v235_v1 = vpop.permute.xlu0 %234   ;;  %628 = vrot.lane.b32.xlu1 %v981_v0, %s1237_s26  ;;  %s1246_s26 = smov 27   ;;  %v1013_v0 = vld [vmem:[%s1686_s0 + $0x2c] sm:$0x1]  }
  0xb7   :  { %238 = vst.msk [vmem:[#allocation0 + $0x10] sm:$0x1] %vm236_vm3, %v235_v1   ;;  %vm343_vm3 = vcmask 671352  }
  0xb8   :  { %621 = vrot.lane.b32.xlu0 %v980_v63, %s1236_s25  ;;  %v255_v6 = vpop.permute.xlu1 %254   ;;  %v1012_v63 = vld [vmem:[%s1686_s0 + $0x57] sm:$0x1]  }
  0xb9   :  { %258 = vst.msk [vmem:[#allocation0 + $0x10] sm:$0x1] %vm256_vm6, %v255_v6   ;;  %vm363_vm6 = vcmask 646752  }
  0xba   :  { %v249_v5 = vpop.permute.xlu0 %248   ;;  %641 = vrot.lane.b32.xlu1 %v983_v4, %s1239_s3  ;;  %s1248_s3 = smov 25   ;;  %v1015_v4 = vld [vmem:[%s1686_s0 + $0x56] sm:$0x1]  }
  0xbb   :  { %251 = vst.msk [vmem:[#allocation0] sm:$0x1] %vm250_vm5, %v249_v5   ;;  %vm356_vm5 = vcmask 654952  }
  0xbc   :  { %634 = vrot.lane.b32.xlu0 %v982_v3, %s1238_s2  ;;  %v269_v10 = vpop.permute.xlu1 %268   ;;  %v1014_v3 = vld [vmem:[%s1686_s0 + $0x1] sm:$0x1]  }
  0xbd   :  { %271 = vst.msk [vmem:[#allocation0] sm:$0x1] %vm270_vm8, %v269_v10   ;;  %vm376_vm8 = vcmask 630352  }
  0xbe   :  { %v262_v9 = vpop.permute.xlu0 %261   ;;  %654 = vrot.lane.b32.xlu1 %v985_v8, %s1241_s9  ;;  %s1250_s9 = smov 23  }
  0xbf   :  { %265 = vst.msk [vmem:[#allocation0 + $0x8] sm:$0x1] %vm263_vm7, %v262_v9   ;;  %vm370_vm7 = vcmask 638552  }
  0xc0   :  { %648 = vrot.lane.b32.xlu0 %v984_v7, %s1240_s8  ;;  %v282_v14 = vpop.permute.xlu1 %281   ;;  %v1016_v7 = vld [vmem:[%s1686_s0 + $0x2b] sm:$0x1]   ;;  %s1272_s0 = smov 1  }
  0xc1   :  { %285 = vst.msk [vmem:[#allocation0 + $0x8] sm:$0x1] %vm283_vm10, %v282_v14   ;;  %vm390_vm10 = vcmask 613952  }
  0xc2   :  { %v275_v13 = vpop.permute.xlu0 %274   ;;  %668 = vrot.lane.b32.xlu1 %v987_v12, %s1243_s15  ;;  %s1252_s15 = smov 21  }
  0xc3   :  { %278 = vst.msk [vmem:[#allocation0 + $0x10] sm:$0x1] %vm276_vm9, %v275_v13   ;;  %vm383_vm9 = vcmask 622152  }
  0xc4   :  { %661 = vrot.lane.b32.xlu0 %v986_v11, %s1242_s14  ;;  %v295_v18 = vpop.permute.xlu1 %294  }
  0xc5   :  { %298 = vst.msk [vmem:[#allocation0 + $0x10] sm:$0x1] %vm296_vm12, %v295_v18   ;;  %vm403_vm12 = vcmask 597552  }
  0xc6   :  { %v289_v17 = vpop.permute.xlu0 %288   ;;  %681 = vrot.lane.b32.xlu1 %v989_v16, %s1245_s21  ;;  %s1254_s21 = smov 19  }
  0xc7   :  { %291 = vst.msk [vmem:[#allocation0] sm:$0x1] %vm290_vm11, %v289_v17   ;;  %vm396_vm11 = vcmask 605752  }
  0xc8   :  { %674 = vrot.lane.b32.xlu0 %v988_v15, %s1244_s20  ;;  %v309_v22 = vpop.permute.xlu1 %308  }
  0xc9   :  { %311 = vst.msk [vmem:[#allocation0] sm:$0x1] %vm310_vm14, %v309_v22   ;;  %vm416_vm14 = vcmask 581152  }
  0xca   :  { %v302_v21 = vpop.permute.xlu0 %301   ;;  %694 = vrot.lane.b32.xlu1 %v991_v20, %s1247_s27  ;;  %s1256_s27 = smov 17  }
  0xcb   :  { %305 = vst.msk [vmem:[#allocation0 + $0x8] sm:$0x1] %vm303_vm13, %v302_v21   ;;  %vm410_vm13 = vcmask 589352  }
  0xcc   :  { %688 = vrot.lane.b32.xlu0 %v990_v19, %s1246_s26  ;;  %v322_v26 = vpop.permute.xlu1 %321  }
  0xcd   :  { %325 = vst.msk [vmem:[#allocation0 + $0x8] sm:$0x1] %vm323_vm0, %v322_v26   ;;  %vm430_vm0 = vcmask 564752  }
  0xce   :  { %v315_v25 = vpop.permute.xlu0 %314   ;;  %708 = vrot.lane.b32.xlu1 %v993_v24, %s1249_s4  ;;  %s1258_s4 = smov 15  }
  0xcf   :  { %318 = vst.msk [vmem:[#allocation0 + $0x10] sm:$0x1] %vm316_vm15, %v315_v25   ;;  %vm423_vm15 = vcmask 572952  }
  0xd0   :  { %701 = vrot.lane.b32.xlu0 %v992_v23, %s1248_s3  ;;  %v335_v30 = vpop.permute.xlu1 %334  }
  0xd1   :  { %338 = vst.msk [vmem:[#allocation0 + $0x10] sm:$0x1] %vm336_vm2, %v335_v30   ;;  %vm443_vm2 = vcmask 548352  }
  0xd2   :  { %v329_v29 = vpop.permute.xlu0 %328   ;;  %721 = vrot.lane.b32.xlu1 %v995_v28, %s1251_s10  ;;  %s1260_s10 = smov 13  }
  0xd3   :  { %331 = vst.msk [vmem:[#allocation0] sm:$0x1] %vm330_vm1, %v329_v29   ;;  %vm436_vm1 = vcmask 556552  }
  0xd4   :  { %714 = vrot.lane.b32.xlu0 %v994_v27, %s1250_s9  ;;  %v349_v34 = vpop.permute.xlu1 %348  }
  0xd5   :  { %351 = vst.msk [vmem:[#allocation0] sm:$0x1] %vm350_vm4, %v349_v34   ;;  %vm456_vm4 = vcmask 531952  }
  0xd6   :  { %v342_v33 = vpop.permute.xlu0 %341   ;;  %734 = vrot.lane.b32.xlu1 %v997_v32, %s1253_s16  ;;  %s1262_s16 = smov 11  }
  0xd7   :  { %345 = vst.msk [vmem:[#allocation0 + $0x8] sm:$0x1] %vm343_vm3, %v342_v33   ;;  %vm450_vm3 = vcmask 540152  }
  0xd8   :  { %728 = vrot.lane.b32.xlu0 %v996_v31, %s1252_s15  ;;  %v362_v38 = vpop.permute.xlu1 %361  }
  0xd9   :  { %365 = vst.msk [vmem:[#allocation0 + $0x8] sm:$0x1] %vm363_vm6, %v362_v38   ;;  %vm470_vm6 = vcmask 515552  }
  0xda   :  { %v355_v37 = vpop.permute.xlu0 %354   ;;  %748 = vrot.lane.b32.xlu1 %v999_v36, %s1255_s22  ;;  %s1264_s22 = smov 9  }
  0xdb   :  { %358 = vst.msk [vmem:[#allocation0 + $0x10] sm:$0x1] %vm356_vm5, %v355_v37   ;;  %vm463_vm5 = vcmask 523752  }
  0xdc   :  { %741 = vrot.lane.b32.xlu0 %v998_v35, %s1254_s21  ;;  %v375_v42 = vpop.permute.xlu1 %374  }
  0xdd   :  { %378 = vst.msk [vmem:[#allocation0 + $0x10] sm:$0x1] %vm376_vm8, %v375_v42   ;;  %vm483_vm8 = vcmask 499152  }
  0xde   :  { %v369_v41 = vpop.permute.xlu0 %368   ;;  %761 = vrot.lane.b32.xlu1 %v1001_v40, %s1257_s28  ;;  %s1266_s28 = smov 7  }
  0xdf   :  { %371 = vst.msk [vmem:[#allocation0] sm:$0x1] %vm370_vm7, %v369_v41   ;;  %vm476_vm7 = vcmask 507352  }
  0xe0   :  { %754 = vrot.lane.b32.xlu0 %v1000_v39, %s1256_s27  ;;  %v389_v46 = vpop.permute.xlu1 %388  }
  0xe1   :  { %391 = vst.msk [vmem:[#allocation0] sm:$0x1] %vm390_vm10, %v389_v46   ;;  %vm496_vm10 = vcmask 482752  }
  0xe2   :  { %v382_v45 = vpop.permute.xlu0 %381   ;;  %774 = vrot.lane.b32.xlu1 %v1003_v44, %s1259_s5  ;;  %s1268_s5 = smov 5  }
  0xe3   :  { %385 = vst.msk [vmem:[#allocation0 + $0x8] sm:$0x1] %vm383_vm9, %v382_v45   ;;  %vm490_vm9 = vcmask 490952  }
  0xe4   :  { %768 = vrot.lane.b32.xlu0 %v1002_v43, %s1258_s4  ;;  %v402_v50 = vpop.permute.xlu1 %401  }
  0xe5   :  { %405 = vst.msk [vmem:[#allocation0 + $0x8] sm:$0x1] %vm403_vm12, %v402_v50   ;;  %vm510_vm12 = vcmask 466352  }
  0xe6   :  { %v395_v49 = vpop.permute.xlu0 %394   ;;  %788 = vrot.lane.b32.xlu1 %v1005_v48, %s1261_s11  ;;  %s1270_s11 = smov 3  }
  0xe7   :  { %398 = vst.msk [vmem:[#allocation0 + $0x10] sm:$0x1] %vm396_vm11, %v395_v49   ;;  %vm503_vm11 = vcmask 474552  }
  0xe8   :  { %781 = vrot.lane.b32.xlu0 %v1004_v47, %s1260_s10  ;;  %v415_v54 = vpop.permute.xlu1 %414  }
  0xe9   :  { %418 = vst.msk [vmem:[#allocation0 + $0x10] sm:$0x1] %vm416_vm14, %v415_v54   ;;  %vm523_vm14 = vcmask 449952  }
  0xea   :  { %v409_v53 = vpop.permute.xlu0 %408   ;;  %801 = vrot.lane.b32.xlu1 %v1007_v52, %s1263_s17 }
  0xeb   :  { %411 = vst.msk [vmem:[#allocation0] sm:$0x1] %vm410_vm13, %v409_v53   ;;  %vm516_vm13 = vcmask 458152  }
  0xec   :  { %794 = vrot.lane.b32.xlu0 %v1006_v51, %s1262_s16  ;;  %v429_v58 = vpop.permute.xlu1 %428  }
  0xed   :  { %431 = vst.msk [vmem:[#allocation0] sm:$0x1] %vm430_vm0, %v429_v58   ;;  %vm536_vm0 = vcmask 433552  }
  0xee   :  { %v422_v57 = vpop.permute.xlu0 %421   ;;  %814 = vrot.lane.b32.xlu1 %v1009_v56, %s1265_s23 }
  0xef   :  { %425 = vst.msk [vmem:[#allocation0 + $0x8] sm:$0x1] %vm423_vm15, %v422_v57   ;;  %vm530_vm15 = vcmask 441752  }
  0xf0   :  { %808 = vrot.lane.b32.xlu0 %v1008_v55, %s1264_s22  ;;  %v442_v62 = vpop.permute.xlu1 %441  }
  0xf1   :  { %445 = vst.msk [vmem:[#allocation0 + $0x8] sm:$0x1] %vm443_vm2, %v442_v62   ;;  %vm550_vm2 = vcmask 417152  }
  0xf2   :  { %v435_v61 = vpop.permute.xlu0 %434   ;;  %828 = vrot.lane.b32.xlu1 %v1011_v60, %s1267_s29 }
  0xf3   :  { %438 = vst.msk [vmem:[#allocation0 + $0x10] sm:$0x1] %vm436_vm1, %v435_v61   ;;  %vm543_vm1 = vcmask 425352  }
  0xf4   :  { %821 = vrot.lane.b32.xlu0 %v1010_v59, %s1266_s28  ;;  %v455_v2 = vpop.permute.xlu1 %454  }
  0xf5   :  { %458 = vst.msk [vmem:[#allocation0 + $0x10] sm:$0x1] %vm456_vm4, %v455_v2   ;;  %vm563_vm4 = vcmask 400752  }
  0xf6   :  { %v449_v1 = vpop.permute.xlu0 %448   ;;  %841 = vrot.lane.b32.xlu1 %v1013_v0, %s1269_s6 }
  0xf7   :  { %451 = vst.msk [vmem:[#allocation0] sm:$0x1] %vm450_vm3, %v449_v1   ;;  %vm556_vm3 = vcmask 408952  }
  0xf8   :  { %834 = vrot.lane.b32.xlu0 %v1012_v63, %s1268_s5  ;;  %v469_v6 = vpop.permute.xlu1 %468  }
  0xf9   :  { %471 = vst.msk [vmem:[#allocation0] sm:$0x1] %vm470_vm6, %v469_v6   ;;  %vm576_vm6 = vcmask 384352  }
  0xfa   :  { %v462_v5 = vpop.permute.xlu0 %461   ;;  %854 = vrot.lane.b32.xlu1 %v1015_v4, %s1271_s12 }
  0xfb   :  { %465 = vst.msk [vmem:[#allocation0 + $0x8] sm:$0x1] %vm463_vm5, %v462_v5   ;;  %vm570_vm5 = vcmask 392552  }
  0xfc   :  { %848 = vrot.lane.b32.xlu0 %v1014_v3, %s1270_s11  ;;  %v482_v9 = vpop.permute.xlu1 %481  }
  0xfd   :  { %485 = vst.msk [vmem:[#allocation0 + $0x8] sm:$0x1] %vm483_vm8, %v482_v9   ;;  %vm590_vm8 = vcmask 367952  }
  0xfe   :  { %v475_v8 = vpop.permute.xlu0 %474  }
  0xff   :  { %478 = vst.msk [vmem:[#allocation0 + $0x10] sm:$0x1] %vm476_vm7, %v475_v8   ;;  %vm583_vm7 = vcmask 376152  }
 0x100   :  { %861 = vrot.lane.b32.xlu0 %v1016_v7, %s1272_s0  ;;  %v495_v11 = vpop.permute.xlu1 %494  }
 0x101   :  { %498 = vst.msk [vmem:[#allocation0 + $0x10] sm:$0x1] %vm496_vm10, %v495_v11   ;;  %vm603_vm10 = vcmask 351552  }
 0x102   :  { %v489_v10 = vpop.permute.xlu0 %488  }
 0x103   :  { %491 = vst.msk [vmem:[#allocation0] sm:$0x1] %vm490_vm9, %v489_v10   ;;  %vm596_vm9 = vcmask 359752  }
 0x104   :  { %v509_v13 = vpop.permute.xlu1 %508  }
 0x105   :  { %511 = vst.msk [vmem:[#allocation0] sm:$0x1] %vm510_vm12, %v509_v13   ;;  %vm616_vm12 = vcmask 335152  }
 0x106   :  { %v502_v12 = vpop.permute.xlu0 %501  }
 0x107   :  { %505 = vst.msk [vmem:[#allocation0 + $0x8] sm:$0x1] %vm503_vm11, %v502_v12   ;;  %vm610_vm11 = vcmask 343352  }
 0x108   :  { %v522_v15 = vpop.permute.xlu1 %521  }
 0x109   :  { %525 = vst.msk [vmem:[#allocation0 + $0x8] sm:$0x1] %vm523_vm14, %v522_v15   ;;  %vm630_vm14 = vcmask 318752  }
 0x10a   :  { %v515_v14 = vpop.permute.xlu0 %514  }
 0x10b   :  { %518 = vst.msk [vmem:[#allocation0 + $0x10] sm:$0x1] %vm516_vm13, %v515_v14   ;;  %vm623_vm13 = vcmask 326952  }
 0x10c   :  { %v535_v17 = vpop.permute.xlu1 %534  }
 0x10d   :  { %538 = vst.msk [vmem:[#allocation0 + $0x10] sm:$0x1] %vm536_vm0, %v535_v17   ;;  %vm643_vm0 = vcmask 302352  }
 0x10e   :  { %v529_v16 = vpop.permute.xlu0 %528  }
 0x10f   :  { %531 = vst.msk [vmem:[#allocation0] sm:$0x1] %vm530_vm15, %v529_v16   ;;  %vm636_vm15 = vcmask 310552  }
 0x110   :  { %v549_v19 = vpop.permute.xlu1 %548  }
 0x111   :  { %551 = vst.msk [vmem:[#allocation0] sm:$0x1] %vm550_vm2, %v549_v19   ;;  %vm656_vm2 = vcmask 285952  }
 0x112   :  { %v542_v18 = vpop.permute.xlu0 %541  }
 0x113   :  { %545 = vst.msk [vmem:[#allocation0 + $0x8] sm:$0x1] %vm543_vm1, %v542_v18   ;;  %vm650_vm1 = vcmask 294152  }
 0x114   :  { %v562_v21 = vpop.permute.xlu1 %561  }
 0x115   :  { %565 = vst.msk [vmem:[#allocation0 + $0x8] sm:$0x1] %vm563_vm4, %v562_v21   ;;  %vm670_vm4 = vcmask 269552  }
 0x116   :  { %v555_v20 = vpop.permute.xlu0 %554  }
 0x117   :  { %558 = vst.msk [vmem:[#allocation0 + $0x10] sm:$0x1] %vm556_vm3, %v555_v20   ;;  %vm663_vm3 = vcmask 277752  }
 0x118   :  { %v575_v23 = vpop.permute.xlu1 %574  }
 0x119   :  { %578 = vst.msk [vmem:[#allocation0 + $0x10] sm:$0x1] %vm576_vm6, %v575_v23   ;;  %vm683_vm6 = vcmask 253152  }
 0x11a   :  { %v569_v22 = vpop.permute.xlu0 %568  }
 0x11b   :  { %571 = vst.msk [vmem:[#allocation0] sm:$0x1] %vm570_vm5, %v569_v22   ;;  %vm676_vm5 = vcmask 261352  }
 0x11c   :  { %v589_v25 = vpop.permute.xlu1 %588  }
 0x11d   :  { %591 = vst.msk [vmem:[#allocation0] sm:$0x1] %vm590_vm8, %v589_v25   ;;  %vm696_vm8 = vcmask 236752  }
 0x11e   :  { %v582_v24 = vpop.permute.xlu0 %581  }
 0x11f   :  { %585 = vst.msk [vmem:[#allocation0 + $0x8] sm:$0x1] %vm583_vm7, %v582_v24   ;;  %vm690_vm7 = vcmask 244952  }
 0x120   :  { %v602_v27 = vpop.permute.xlu1 %601  }
 0x121   :  { %605 = vst.msk [vmem:[#allocation0 + $0x8] sm:$0x1] %vm603_vm10, %v602_v27   ;;  %vm710_vm10 = vcmask 220352  }
 0x122   :  { %v595_v26 = vpop.permute.xlu0 %594  }
 0x123   :  { %598 = vst.msk [vmem:[#allocation0 + $0x10] sm:$0x1] %vm596_vm9, %v595_v26   ;;  %vm703_vm9 = vcmask 228552  }
 0x124   :  { %v615_v29 = vpop.permute.xlu1 %614  }
 0x125   :  { %618 = vst.msk [vmem:[#allocation0 + $0x10] sm:$0x1] %vm616_vm12, %v615_v29   ;;  %vm723_vm12 = vcmask 203952  }
 0x126   :  { %v609_v28 = vpop.permute.xlu0 %608  }
 0x127   :  { %611 = vst.msk [vmem:[#allocation0] sm:$0x1] %vm610_vm11, %v609_v28   ;;  %vm716_vm11 = vcmask 212152  }
 0x128   :  { %v629_v31 = vpop.permute.xlu1 %628  }
 0x129   :  { %631 = vst.msk [vmem:[#allocation0] sm:$0x1] %vm630_vm14, %v629_v31   ;;  %vm736_vm14 = vcmask 187552  }
 0x12a   :  { %v622_v30 = vpop.permute.xlu0 %621  }
 0x12b   :  { %625 = vst.msk [vmem:[#allocation0 + $0x8] sm:$0x1] %vm623_vm13, %v622_v30   ;;  %vm730_vm13 = vcmask 195752  }
 0x12c   :  { %v642_v33 = vpop.permute.xlu1 %641  }
 0x12d   :  { %645 = vst.msk [vmem:[#allocation0 + $0x8] sm:$0x1] %vm643_vm0, %v642_v33   ;;  %vm750_vm0 = vcmask 171152  }
 0x12e   :  { %v635_v32 = vpop.permute.xlu0 %634  }
 0x12f   :  { %638 = vst.msk [vmem:[#allocation0 + $0x10] sm:$0x1] %vm636_vm15, %v635_v32   ;;  %vm743_vm15 = vcmask 179352  }
 0x130   :  { %v655_v35 = vpop.permute.xlu1 %654  }
 0x131   :  { %658 = vst.msk [vmem:[#allocation0 + $0x10] sm:$0x1] %vm656_vm2, %v655_v35   ;;  %vm763_vm2 = vcmask 154752  }
 0x132   :  { %v649_v34 = vpop.permute.xlu0 %648  }
 0x133   :  { %651 = vst.msk [vmem:[#allocation0] sm:$0x1] %vm650_vm1, %v649_v34   ;;  %vm756_vm1 = vcmask 162952  }
 0x134   :  { %v669_v37 = vpop.permute.xlu1 %668  }
 0x135   :  { %671 = vst.msk [vmem:[#allocation0] sm:$0x1] %vm670_vm4, %v669_v37   ;;  %vm776_vm4 = vcmask 138352  }
 0x136   :  { %v662_v36 = vpop.permute.xlu0 %661  }
 0x137   :  { %665 = vst.msk [vmem:[#allocation0 + $0x8] sm:$0x1] %vm663_vm3, %v662_v36   ;;  %vm770_vm3 = vcmask 146552  }
 0x138   :  { %v682_v39 = vpop.permute.xlu1 %681  }
 0x139   :  { %685 = vst.msk [vmem:[#allocation0 + $0x8] sm:$0x1] %vm683_vm6, %v682_v39   ;;  %vm790_vm6 = vcmask 121952  }
 0x13a   :  { %v675_v38 = vpop.permute.xlu0 %674  }
 0x13b   :  { %678 = vst.msk [vmem:[#allocation0 + $0x10] sm:$0x1] %vm676_vm5, %v675_v38   ;;  %vm783_vm5 = vcmask 130152  }
 0x13c   :  { %v695_v41 = vpop.permute.xlu1 %694  }
 0x13d   :  { %698 = vst.msk [vmem:[#allocation0 + $0x10] sm:$0x1] %vm696_vm8, %v695_v41   ;;  %vm803_vm8 = vcmask 105552  }
 0x13e   :  { %v689_v40 = vpop.permute.xlu0 %688  }
 0x13f   :  { %691 = vst.msk [vmem:[#allocation0] sm:$0x1] %vm690_vm7, %v689_v40   ;;  %vm796_vm7 = vcmask 113752  }
 0x140   :  { %v709_v43 = vpop.permute.xlu1 %708  }
 0x141   :  { %711 = vst.msk [vmem:[#allocation0] sm:$0x1] %vm710_vm10, %v709_v43   ;;  %vm816_vm10 = vcmask 89152  }
 0x142   :  { %v702_v42 = vpop.permute.xlu0 %701  }
 0x143   :  { %705 = vst.msk [vmem:[#allocation0 + $0x8] sm:$0x1] %vm703_vm9, %v702_v42   ;;  %vm810_vm9 = vcmask 97352  }
 0x144   :  { %v722_v45 = vpop.permute.xlu1 %721  }
 0x145   :  { %725 = vst.msk [vmem:[#allocation0 + $0x8] sm:$0x1] %vm723_vm12, %v722_v45   ;;  %vm830_vm12 = vcmask 72752  }
 0x146   :  { %v715_v44 = vpop.permute.xlu0 %714  }
 0x147   :  { %718 = vst.msk [vmem:[#allocation0 + $0x10] sm:$0x1] %vm716_vm11, %v715_v44   ;;  %vm823_vm11 = vcmask 80952  }
 0x148   :  { %v735_v47 = vpop.permute.xlu1 %734  }
 0x149   :  { %738 = vst.msk [vmem:[#allocation0 + $0x10] sm:$0x1] %vm736_vm14, %v735_v47   ;;  %vm843_vm14 = vcmask 56352  }
 0x14a   :  { %v729_v46 = vpop.permute.xlu0 %728  }
 0x14b   :  { %731 = vst.msk [vmem:[#allocation0] sm:$0x1] %vm730_vm13, %v729_v46   ;;  %vm836_vm13 = vcmask 64552  }
 0x14c   :  { %v749_v49 = vpop.permute.xlu1 %748  }
 0x14d   :  { %751 = vst.msk [vmem:[#allocation0] sm:$0x1] %vm750_vm0, %v749_v49   ;;  %vm856_vm0 = vcmask 39952  }
 0x14e   :  { %v742_v48 = vpop.permute.xlu0 %741  }
 0x14f   :  { %745 = vst.msk [vmem:[#allocation0 + $0x8] sm:$0x1] %vm743_vm15, %v742_v48   ;;  %vm850_vm15 = vcmask 48152  }
 0x150   :  { %v762_v51 = vpop.permute.xlu1 %761  }
 0x151   :  { %765 = vst.msk [vmem:[#allocation0 + $0x8] sm:$0x1] %vm763_vm2, %v762_v51  }
 0x152   :  { %v755_v50 = vpop.permute.xlu0 %754  }
 0x153   :  { %758 = vst.msk [vmem:[#allocation0 + $0x10] sm:$0x1] %vm756_vm1, %v755_v50   ;;  %vm863_vm1 = vcmask 31752  }
 0x154   :  { %v775_v53 = vpop.permute.xlu1 %774  }
 0x155   :  { %778 = vst.msk [vmem:[#allocation0 + $0x10] sm:$0x1] %vm776_vm4, %v775_v53  }
 0x156   :  { %v769_v52 = vpop.permute.xlu0 %768  }
 0x157   :  { %771 = vst.msk [vmem:[#allocation0] sm:$0x1] %vm770_vm3, %v769_v52  }
 0x158   :  { %v789_v55 = vpop.permute.xlu1 %788  }
 0x159   :  { %791 = vst.msk [vmem:[#allocation0] sm:$0x1] %vm790_vm6, %v789_v55  }
 0x15a   :  { %v782_v54 = vpop.permute.xlu0 %781  }
 0x15b   :  { %785 = vst.msk [vmem:[#allocation0 + $0x8] sm:$0x1] %vm783_vm5, %v782_v54  }
 0x15c   :  { %v802_v57 = vpop.permute.xlu1 %801  }
 0x15d   :  { %805 = vst.msk [vmem:[#allocation0 + $0x8] sm:$0x1] %vm803_vm8, %v802_v57  }
 0x15e   :  { %v795_v56 = vpop.permute.xlu0 %794  }
 0x15f   :  { %798 = vst.msk [vmem:[#allocation0 + $0x10] sm:$0x1] %vm796_vm7, %v795_v56  }
 0x160   :  { %v815_v59 = vpop.permute.xlu1 %814  }
 0x161   :  { %818 = vst.msk [vmem:[#allocation0 + $0x10] sm:$0x1] %vm816_vm10, %v815_v59  }
 0x162   :  { %v809_v58 = vpop.permute.xlu0 %808  }
 0x163   :  { %811 = vst.msk [vmem:[#allocation0] sm:$0x1] %vm810_vm9, %v809_v58  }
 0x164   :  { %v829_v61 = vpop.permute.xlu1 %828  }
 0x165   :  { %831 = vst.msk [vmem:[#allocation0] sm:$0x1] %vm830_vm12, %v829_v61  }
 0x166   :  { %v822_v60 = vpop.permute.xlu0 %821  }
 0x167   :  { %825 = vst.msk [vmem:[#allocation0 + $0x8] sm:$0x1] %vm823_vm11, %v822_v60  }
 0x168   :  { %v842_v63 = vpop.permute.xlu1 %841  }
 0x169   :  { %845 = vst.msk [vmem:[#allocation0 + $0x8] sm:$0x1] %vm843_vm14, %v842_v63  }
 0x16a   :  { %v835_v62 = vpop.permute.xlu0 %834  }
 0x16b   :  { %838 = vst.msk [vmem:[#allocation0 + $0x10] sm:$0x1] %vm836_vm13, %v835_v62  }
 0x16c   :  { %v855_v1 = vpop.permute.xlu1 %854  }
 0x16d   :  { %858 = vst.msk [vmem:[#allocation0 + $0x10] sm:$0x1] %vm856_vm0, %v855_v1  }
 0x16e   :  { %v849_v0 = vpop.permute.xlu0 %848  }
 0x16f   :  { %851 = vst.msk [vmem:[#allocation0] sm:$0x1] %vm850_vm15, %v849_v0  }
 0x172   :  { %v862_v2 = vpop.permute.xlu0 %861  }
 0x173   :  { %865 = vst.msk [vmem:[#allocation0 + $0x8] sm:$0x1] %vm863_vm1, %v862_v2  }
 0x174   :  { %v881_v4 = vld [vmem:[#allocation0 + $0x10] sm:$0x1] }
 0x175   :  { %1018 = vst [vmem:[%s1687_s1 + $0x2] sm:$0x1] %v881_v4 }
 0x176   :  { %v870_v3 = vld [vmem:[#allocation0] sm:$0x1] }
 0x177   :  { %873 = vst [vmem:[%s1687_s1] sm:$0x1] %v870_v3 }
 0x17a   :  { %v875_v5 = vld [vmem:[#allocation0 + $0x8] sm:$0x1] }
 0x17b   :  { %1017 = vst [vmem:[%s1687_s1 + $0x1] sm:$0x1] %v875_v5 }

// kernel: unit_sphere_norm.1
= control target key start
LH: loop header
LB: loop body
LE: loop exit
PB: predicated region body
PF: predicated region fallthrough
CT: control target
= control target key end

     0   :  { %v17_v1 = vlaneseq  ;;  %s690_s0 = inlined_call_operand.vmem [shape: f32[3,384], index: 0, kind: input, shape index: {}, may-alias: {0,2}]   ;;  %s691_s1 = inlined_call_operand.vmem [shape: s32[1,384], index: 1, kind: input, shape index: {}]   ;;  %s692_s2 = inlined_call_operand.vmem [shape: f32[3,384], index: 2, kind: output, shape index: {0}, may-alias: {0,2}]   ;;  %s693_s3 = inlined_call_operand.hbm [shape: f32[1,1], index: 3, kind: output, shape index: {1}]  }
   0x1   :  { %v535_v0 = vld [vmem:[%s690_s0] sm:$0x77] }
   0x2   :  { %v31_v2 = vcombine.high %v535_v0, %v535_v0 }
   0x3   :  { %9 = vsyncpa [#allocation3], 0  ;;  %v539_v3 = vshrl.u32 %v17_v1, 7  ;;  %v21_v4 = vand.u32 127, %v17_v1  ;;  %vm39_vm0 = vcmask 1042432   ;;  %vm148_vm7 = vcmask 1040384  }
   0x4   :  { %v510_v5 = vmov 1966171168   ;;  %v82_v7 = vsel %vm39_vm0, %v535_v0, 0.0  ;;  %v89_v8 = vsel %vm39_vm0, %v31_v2, 0.0  ;;  %v548_v14 = vld [vmem:[%s690_s0 + $0x8] sm:$0x7] }
   0x5   :  { %v109_v6 = vunpack.c.l.s4 %v510_v5  ;;  %v19_v9 = vmul.u32 384, %v539_v3  ;;  %v22_v10 = vadd.s32 128, %v21_v4  ;;  %v23_v11 = vadd.s32 256, %v21_v4 }
   0x6   :  { %v83_v13 = vrot.slane %v82_v7, 4  ;;  %v90_v20 = vrot.slane %v89_v8, 4  ;;  %v96_v21 = vsel %vm39_vm0, %v548_v14, 0.0  ;;  %vm463_vm8 = vcmask 0  }
   0x7   :  { %v110_v12 = vunpack.c.0.s8 %v109_v6  ;;  %v24_v15 = vadd.s32 %v21_v4, %v19_v9  ;;  %v25_v16 = vadd.s32 %v22_v10, %v19_v9  ;;  %v26_v17 = vadd.s32 %v23_v11, %v19_v9 }
   0x8   :  { %v84_v19 = vadd.f32 %v83_v13, %v82_v7  ;;  %v97_v22 = vrot.slane %v96_v21, 4  ;;  %v91_v46 = vadd.f32 %v90_v20, %v89_v8  ;;  %v568_v13 = vld [vmem:[%s691_s1] sm:$0x7]  ;;  %s511_s1 = smov [#allocation2]  }
   0x9   :  { %v551_v18 = vsub.s32 %v110_v12, %v539_v3  ;;  %vm27_vm1 = vcmp.lt.s32.totalorder %v24_v15, 900  ;;  %vm28_vm2 = vcmp.lt.s32.totalorder %v25_v16, 900  ;;  %vm29_vm3 = vcmp.lt.s32.totalorder %v26_v17, 900  ;;  %s473_s17 = sshll.u32 %s511_s1, 4  ;;  %s474_s17 = int_to_ptr.vmem [resolvable:$true] %s473_s17 }
   0xa   :  { %v33_v23 = vsel %vm27_vm1, %v535_v0, inf  ;;  %v34_v24 = vsel %vm28_vm2, %v31_v2, inf  ;;  %v35_v25 = vsel %vm29_vm3, %v548_v14, inf  ;;  %v36_v26 = vsel %vm27_vm1, %v535_v0, -inf  ;;  %s488_s18 = scalar_lea.vmem %s474_s17, 16  ;;  %s492_s19 = scalar_lea.vmem %s474_s17, 32 }
   0xb   :  { %v40_v27 = vsel %vm39_vm0, %v33_v23, inf  ;;  %v47_v28 = vsel %vm39_vm0, %v34_v24, inf  ;;  %v54_v29 = vsel %vm39_vm0, %v35_v25, inf  ;;  %v37_v30 = vsel %vm28_vm2, %v31_v2, -inf  ;;  %p489_p0 = scmp.ne.s32.totalorder %s474_s17, %s488_s18  ;;  %p493_p1 = scmp.lt.s32.totalorder %s474_s17, %s474_s17 }
   0xc   :  { %v41_v31 = vrot.slane %v40_v27, 4  ;;  %v48_v32 = vrot.slane %v47_v28, 4  ;;  %v55_v33 = vrot.slane %v54_v29, 4  ;;  %v38_v34 = vsel %vm29_vm3, %v548_v14, -inf  ;;  %p494_p2 = scmp.lt.s32.totalorder %s492_s19, %s488_s18 }
   0xd   :  { %v61_v35 = vsel %vm39_vm0, %v36_v26, -inf  ;;  %v68_v36 = vsel %vm39_vm0, %v37_v30, -inf  ;;  %v75_v37 = vsel %vm39_vm0, %v38_v34, -inf  ;;  %v85_v38 = vrot.slane %v84_v19, 2 }
   0xe   :  { %v42_v39 = vmin.f32 %v40_v27, %v41_v31  ;;  %v49_v40 = vmin.f32 %v47_v28, %v48_v32  ;;  %v56_v41 = vmin.f32 %v54_v29, %v55_v33  ;;  %v62_v42 = vrot.slane %v61_v35, 4  ;;  %p495_p3 = por %p494_p2, %p493_p1 }
   0xf   :  { %v69_v43 = vrot.slane %v68_v36, 4  ;;  %v76_v44 = vrot.slane %v75_v37, 4  ;;  %v86_v45 = vadd.f32 %v85_v38, %v84_v19  ;;  %v92_v54 = vrot.slane %v91_v46, 2 }
  0x10   :  { %v43_v47 = vrot.slane %v42_v39, 2  ;;  %v50_v48 = vrot.slane %v49_v40, 2  ;;  %v57_v49 = vrot.slane %v56_v41, 2  ;;  %v63_v50 = vmax.f32 %v61_v35, %v62_v42  ;;  %p496_p4 = pnand %p495_p3, %p489_p0 }
  0x11   :  { %v70_v51 = vmax.f32 %v68_v36, %v69_v43  ;;  %v77_v52 = vmax.f32 %v75_v37, %v76_v44  ;;  %v87_v53 = vrot.slane %v86_v45, 1  ;;  %v93_v62 = vadd.f32 %v92_v54, %v91_v46 }
  0x12   :  { %v44_v55 = vmin.f32 %v42_v39, %v43_v47  ;;  %v51_v56 = vmin.f32 %v49_v40, %v50_v48  ;;  %v58_v57 = vmin.f32 %v56_v41, %v57_v49  ;;  %v64_v58 = vrot.slane %v63_v50, 2 }
  0x13   :  { %v71_v59 = vrot.slane %v70_v51, 2  ;;  %v78_v60 = vrot.slane %v77_v52, 2  ;;  %v88_v61 = vadd.f32 %v87_v53, %v86_v45  ;;  %v94_v7 = vrot.slane %v93_v62, 1 }
  0x14   :  { %v45_v63 = vrot.slane %v44_v55, 1  ;;  %v52_v1 = vrot.slane %v51_v56, 1  ;;  %v59_v2 = vrot.slane %v58_v57, 1  ;;  %v65_v4 = vmax.f32 %v63_v50, %v64_v58 }
  0x15   :  { %v72_v5 = vmax.f32 %v70_v51, %v71_v59  ;;  %v79_v6 = vmax.f32 %v77_v52, %v78_v60  ;;  %v98_v8 = vadd.f32 %v97_v22, %v96_v21  ;;  %v95_v17 = vadd.f32 %v94_v7, %v93_v62 }
  0x16   :  { %v46_v9 = vmin.f32 %v44_v55, %v45_v63  ;;  %v53_v10 = vmin.f32 %v51_v56, %v52_v1  ;;  %v60_v11 = vmin.f32 %v58_v57, %v59_v2  ;;  %v66_v12 = vrot.slane %v65_v4, 1 }
  0x17   :  { %v73_v15 = vrot.slane %v72_v5, 1  ;;  %v80_v16 = vrot.slane %v79_v6, 1  ;;  %v99_v19 = vrot.slane %v98_v8, 2  ;;  %vm259_vm4 = vcmp.eq.s32.totalorder %v568_v13, 1 }
  0x18   :  { %v107_v20 = vcombine.low %v46_v9, %v53_v10  ;;  %v121_v23 = vrot.slane %v60_v11, %v551_v18  ;;  %v67_v24 = vmax.f32 %v65_v4, %v66_v12  ;;  %v210_v30 = vcombine.low %v88_v61, %v95_v17 }
  0x19   :  { %v74_v25 = vmax.f32 %v72_v5, %v73_v15  ;;  %v81_v26 = vmax.f32 %v79_v6, %v80_v16  ;;  %v100_v21 = vadd.f32 %v99_v19, %v98_v8  ;;  %v575_v32 = vsub.s32 0, %v539_v3 }
  0x1a   :  { %v114_v22 = vrot.slane %v107_v20, %v551_v18  ;;  %vm103_vm5 = vcmp.eq.s32.totalorder %v568_v13, 0  ;;  %vm334_vm6 = vcmp.eq.s32.totalorder %v568_v13, 2  ;;  %v580_v33 = vsub.s32 1, %v539_v3 }
  0x1b   :  { %v159_v27 = vcombine.low %v67_v24, %v74_v25  ;;  %v173_v28 = vrot.slane %v81_v26, %v551_v18  ;;  %v101_v29 = vrot.slane %v100_v21, 1  ;;  %v583_v34 = vsub.s32 2, %v539_v3 }
  0x1c   :  { %v122_v31 = vcombine.low %v114_v22, %v121_v23  ;;  %v217_v39 = vrot.slane %v210_v30, %v551_v18 }
  0x1d   :  { %v166_v35 = vrot.slane %v159_v27, %v551_v18  ;;  %v586_v36 = vadd.f32 %v101_v29, %v100_v21 }
  0x1e   :  { %v129_v37 = vrot.slane %v122_v31, %v551_v18 }
  0x1f   :  { %v174_v38 = vcombine.low %v166_v35, %v173_v28  ;;  %v224_v42 = vrot.slane %v586_v36, %v551_v18 }
  0x20   :  { %v260_v40 = vsel %vm259_vm4, %v129_v37, inf  ;;  %v131_v41 = vsel %vm103_vm5, %v129_v37, inf  ;;  %v335_v3 = vsel %vm334_vm6, %v129_v37, inf }
  0x21   :  { %v265_v43 = vrot.slane %v260_v40, %v575_v32  ;;  %v269_v44 = vrot.slane %v260_v40, %v580_v33  ;;  %v273_v45 = vrot.slane %v260_v40, %v583_v34  ;;  %v136_v46 = vrot.slane %v131_v41, %v575_v32 }
  0x22   :  { %v140_v47 = vrot.slane %v131_v41, %v580_v33  ;;  %v144_v48 = vrot.slane %v131_v41, %v583_v34  ;;  %v181_v49 = vrot.slane %v174_v38, %v551_v18  ;;  %v340_v50 = vrot.slane %v335_v3, %v575_v32 }
  0x23   :  { %v277_v51 = vsel %vm148_vm7, %v265_v43, inf  ;;  %v278_v52 = vsel %vm148_vm7, %v269_v44, inf  ;;  %v279_v53 = vsel %vm148_vm7, %v273_v45, inf  ;;  %v149_v54 = vsel %vm148_vm7, %v136_v46, inf }
  0x24   :  { %v280_v55 = vmin.f32 %v277_v51, %v278_v52  ;;  %v150_v56 = vsel %vm148_vm7, %v140_v47, inf  ;;  %v151_v57 = vsel %vm148_vm7, %v144_v48, inf  ;;  %v284_v58 = vsel %vm259_vm4, %v181_v49, -inf }
  0x25   :  { %v152_v59 = vmin.f32 %v149_v54, %v150_v56  ;;  %v289_v60 = vrot.slane %v284_v58, %v575_v32  ;;  %v293_v61 = vrot.slane %v284_v58, %v580_v33  ;;  %v297_v62 = vrot.slane %v284_v58, %v583_v34 }
  0x26   :  { %v281_v63 = vmin.f32 %v280_v55, %v279_v53  ;;  %v183_v1 = vsel %vm103_vm5, %v181_v49, -inf  ;;  %v359_v2 = vsel %vm334_vm6, %v181_v49, -inf  ;;  %v344_v4 = vrot.slane %v335_v3, %v580_v33 }
  0x27   :  { %v153_v5 = vmin.f32 %v152_v59, %v151_v57  ;;  %v301_v6 = vsel %vm148_vm7, %v289_v60, -inf  ;;  %v302_v7 = vsel %vm148_vm7, %v293_v61, -inf  ;;  %v303_v8 = vsel %vm148_vm7, %v297_v62, -inf }
  0x28   :  { %282 = vmin.xlane.f32.xlu1 %v281_v63  ;;  %v304_v9 = vmax.f32 %v301_v6, %v302_v7  ;;  %v188_v10 = vrot.slane %v183_v1, %v575_v32  ;;  %v192_v11 = vrot.slane %v183_v1, %v580_v33  ;;  %v196_v12 = vrot.slane %v183_v1, %v583_v34 }
  0x29   :  { %154 = vmin.xlane.f32.xlu0 %v153_v5  ;;  %v364_v15 = vrot.slane %v359_v2, %v575_v32  ;;  %v368_v16 = vrot.slane %v359_v2, %v580_v33  ;;  %v372_v17 = vrot.slane %v359_v2, %v583_v34  ;;  %v348_v19 = vrot.slane %v335_v3, %v583_v34 }
  0x2a   :  { %v305_v20 = vmax.f32 %v304_v9, %v303_v8  ;;  %v200_v23 = vsel %vm148_vm7, %v188_v10, -inf  ;;  %v201_v24 = vsel %vm148_vm7, %v192_v11, -inf  ;;  %v202_v25 = vsel %vm148_vm7, %v196_v12, -inf }
  0x2b   :  { %v203_v26 = vmax.f32 %v200_v23, %v201_v24  ;;  %v376_v21 = vsel %vm148_vm7, %v364_v15, -inf  ;;  %v377_v22 = vsel %vm148_vm7, %v368_v16, -inf  ;;  %v378_v27 = vsel %vm148_vm7, %v372_v17, -inf }
  0x2c   :  { %306 = vmax.xlane.f32.xlu1 %v305_v20  ;;  %v379_v28 = vmax.f32 %v376_v21, %v377_v22  ;;  %v352_v29 = vsel %vm148_vm7, %v340_v50, inf  ;;  %v353_v30 = vsel %vm148_vm7, %v344_v4, inf  ;;  %v354_v31 = vsel %vm148_vm7, %v348_v19, inf }
  0x2d   :  { %v204_v35 = vmax.f32 %v203_v26, %v202_v25  ;;  %v355_v36 = vmin.f32 %v352_v29, %v353_v30  ;;  %v225_v37 = vcombine.low %v217_v39, %v224_v42 }
  0x2e   :  { %v380_v38 = vmax.f32 %v379_v28, %v378_v27 }
  0x2f   :  { %205 = vmax.xlane.f32.xlu0 %v204_v35  ;;  %v356_v40 = vmin.f32 %v355_v36, %v354_v31  ;;  %v232_v41 = vrot.slane %v225_v37, %v551_v18 }
  0x30   :  { %381 = vmax.xlane.f32.xlu1 %v380_v38 }
  0x31   :  { %v234_v3 = vsel %vm103_vm5, %v232_v41, 0.0  ;;  %v308_v43 = vsel %vm259_vm4, %v232_v41, 0.0  ;;  %v383_v44 = vsel %vm334_vm6, %v232_v41, 0.0 }
  0x32   :  { %v239_v45 = vrot.slane %v234_v3, %v575_v32  ;;  %v243_v46 = vrot.slane %v234_v3, %v580_v33  ;;  %v247_v39 = vrot.slane %v234_v3, %v583_v34  ;;  %v313_v42 = vrot.slane %v308_v43, %v575_v32 }
  0x33   :  { %357 = vmin.xlane.f32.xlu0 %v356_v40  ;;  %v317_v18 = vrot.slane %v308_v43, %v580_v33  ;;  %v321_v47 = vrot.slane %v308_v43, %v583_v34  ;;  %v388_v48 = vrot.slane %v383_v44, %v575_v32  ;;  %v392_v49 = vrot.slane %v383_v44, %v580_v33 }
  0x34   :  { %v251_v50 = vsel %vm148_vm7, %v239_v45, 0.0  ;;  %v252_v51 = vsel %vm148_vm7, %v243_v46, 0.0  ;;  %v254_v52 = vsel %vm148_vm7, %v247_v39, 0.0  ;;  %v325_v53 = vsel %vm148_vm7, %v313_v42, 0.0 }
  0x35   :  { %v253_v54 = vadd.f32 %v252_v51, %v251_v50  ;;  %v326_v55 = vsel %vm148_vm7, %v317_v18, 0.0  ;;  %v328_v56 = vsel %vm148_vm7, %v321_v47, 0.0  ;;  %v396_v57 = vrot.slane %v383_v44, %v583_v34 }
  0x36   :  { %v327_v58 = vadd.f32 %v326_v55, %v325_v53  ;;  %v400_v59 = vsel %vm148_vm7, %v388_v48, 0.0  ;;  %v401_v60 = vsel %vm148_vm7, %v392_v49, 0.0 }
  0x37   :  { %v255_v61 = vadd.f32 %v254_v52, %v253_v54  ;;  %v402_v62 = vadd.f32 %v401_v60, %v400_v59  ;;  %v403_v63 = vsel %vm148_vm7, %v396_v57, 0.0 }
  0x38   :  { %v329_v1 = vadd.f32 %v328_v56, %v327_v58 }
  0x39   :  { %256 = vadd.xlane.f32.xlu0 %v255_v61  ;;  %v404_v2 = vadd.f32 %v403_v63, %v402_v62 }
  0x3a   :  { %330 = vadd.xlane.f32.xlu1 %v329_v1 }
  0x3d   :  { %405 = vadd.xlane.f32.xlu0 %v404_v2 }
  0xb1   :  { %v283_v4 = vpop.xlane.xlu1 %282 }
  0xb2   :  { %v155_v5 = vpop.xlane.xlu0 %154 }
  0xb5   :  { %v307_v6 = vpop.xlane.xlu1 %306 }
  0xb6   :  { %v332_v8 = vsub.f32 %v307_v6, %v283_v4 }
  0xb8   :  { %v206_v7 = vpop.xlane.xlu0 %205 }
  0xb9   :  { %v258_v9 = vsub.f32 %v206_v7, %v155_v5  ;;  %v382_v10 = vpop.xlane.xlu1 %381 }
  0xbb   :  { %v333_v12 = vmax.f32 %v258_v9, %v332_v8 }
  0xbc   :  { %v358_v11 = vpop.xlane.xlu0 %357 }
  0xbd   :  { %v407_v15 = vsub.f32 %v382_v10, %v358_v11 }
  0xbf   :  { %v408_v16 = vmax.f32 %v333_v12, %v407_v15 }
  0xc1   :  { %v409_v17 = vadd.f32 0.01, %v408_v16  ;;  %464 = vst.msk [vmem:[#allocation2] sm:$0x1] %vm463_vm8, %v408_v16 }
  0xc2   :  { %v257_v19 = vpop.xlane.xlu0 %256 }
  0xc3   :  { %499 = shalt.err (!%p496_p4)
}
  0xc4   :  { %476 = dma.vmem_to_hbm [thread:$0]  %s474_s17, 16, %s693_s3, [#allocation3]   ;;  %486 = vrcp.f32 %v409_v17  ;;  %v413_v20 = vmul.f32 0.0033333334, %v257_v19  ;;  %v331_v23 = vpop.xlane.xlu1 %330 }
  0xc5   :  { %v421_v24 = vmul.f32 0.0033333334, %v331_v23 }
  0xc6   :  { %v418_v25 = vrot.slane %v413_v20, %v575_v32  ;;  %v406_v21 = vpop.xlane.xlu0 %405 }
  0xc7   :  { %v426_v26 = vrot.slane %v421_v24, %v575_v32  ;;  %v429_v27 = vmul.f32 0.0033333334, %v406_v21 }
  0xc8   :  { %v420_v22 = vsel %vm103_vm5, %v418_v25, 0.0 }
  0xc9   :  { %v428_v28 = vsel %vm259_vm4, %v426_v26, %v420_v22  ;;  %v434_v29 = vrot.slane %v429_v27, %v575_v32 }
  0xcb   :  { %v436_v30 = vsel %vm334_vm6, %v434_v29, %v428_v28 }
  0xcc   :  { %v441_v31 = vrot.slane %v436_v30, %v575_v32  ;;  %v445_v35 = vrot.slane %v436_v30, %v580_v33  ;;  %v449_v36 = vrot.slane %v436_v30, %v583_v34 }
  0xce   :  { %v451_v37 = vcombine.low %v441_v31, %v445_v35  ;;  %v454_v3 = vsub.f32 %v548_v14, %v449_v36 }
  0xd0   :  { %v453_v41 = vsub.f32 %v535_v0, %v451_v37 }
  0xd1   :  { %v487_v38 = vpop.eup %486 }
  0xd2   :  { %v458_v40 = vrot.slane %v487_v38, %v575_v32 }
  0xd4   :  { %v459_v43 = vmul.f32 %v458_v40, %v453_v41  ;;  %v460_v44 = vmul.f32 %v458_v40, %v454_v3 }
  0xd6   :  { %461 = vst [vmem:[%s692_s2] sm:$0x77] %v459_v43  ;;  %462 = vst [vmem:[%s692_s2 + $0x8] sm:$0x7] %v460_v44 }
  0xd7   :  { %508 = dma.done.wait [#allocation3], 16  }
  0xd8   :  { %509 = vsyncadd [#allocation3], 4294967280 }
  0xd9   :  { %482 = vsyncpa [#allocation3], 1 }

</bundles_post_ra>
